<compile_context>
chip_gen: v7x
topology: tpu7x:2x2x1
jax: 0.10.0
libtpu: 0.0.40
codegen_flags: <defaults>
</compile_context>

<pallas_src>
import jax
import jax.numpy as jnp
from jax import lax
from jax.experimental import pallas as pl
from jax.experimental.pallas import tpu as pltpu


def _conv3x3_kernel(x_ref, w_ref, b_ref, o_ref):
    # x_ref: (1, Cin, H, W)     activations (compute dtype, e.g. bf16)
    # w_ref: (Cout, 9*Cin)      im2col-folded weights (compute dtype), resident
    # b_ref: (Cout, 1)          bias (f32)
    # o_ref: (1, Cout, H*W)     output (f32), lane-dense last dim
    _, Cin, H, W = x_ref.shape
    x = x_ref[0]                                         # (Cin, H, W)
    cdt = x.dtype

    # In-kernel zero padding (padding=1 on H and W), built in registers.
    zrow = jnp.zeros((Cin, 1, W), cdt)
    xp = jnp.concatenate([zrow, x, zrow], axis=1)        # (Cin, H+2, W)
    zcol = jnp.zeros((Cin, H + 2, 1), cdt)
    xp = jnp.concatenate([zcol, xp, zcol], axis=2)       # (Cin, H+2, W+2)

    # im2col once: patch matrix (9*Cin, H*W); row order k = (kh*3+kw)*Cin + ci,
    # matching the wrapper's weight reshape.
    taps = []
    for kh in range(3):
        for kw in range(3):
            taps.append(xp[:, kh:kh + H, kw:kw + W].reshape(Cin, H * W))
    x9 = jnp.concatenate(taps, axis=0)                   # (9*Cin, H*W)

    # Single MXU matmul with folded K = 9*Cin; f32 accumulation; bias in f32.
    acc = jnp.dot(w_ref[...], x9, preferred_element_type=jnp.float32)
    acc = acc + b_ref[...]                               # (Cout, 1) broadcast
    o_ref[0] = acc.astype(o_ref.dtype)                   # lane-dense (Cout, H*W)


def downsample_forward(x_nchw, weight_oihw, bias, *, compute_dtype=jnp.bfloat16):
    """Conv2d(Cin, Cout, 3, stride=1, padding=1); x, weight, bias as in PyTorch."""
    N, Cin, H, W = x_nchw.shape
    Cout = weight_oihw.shape[0]

    # im2col-folded weight: (Cout, 9*Cin), k = (kh*3 + kw)*Cin + ci.
    w2 = jnp.transpose(weight_oihw, (0, 2, 3, 1)).reshape(Cout, 9 * Cin)

    x_c = x_nchw.astype(compute_dtype)
    w_c = w2.astype(compute_dtype)
    b2 = bias.reshape(Cout, 1).astype(jnp.float32)

    out_flat = pl.pallas_call(
        _conv3x3_kernel,
        out_shape=jax.ShapeDtypeStruct((N, Cout, H * W), x_nchw.dtype),
        grid_spec=pltpu.PrefetchScalarGridSpec(
            num_scalar_prefetch=0,
            grid=(N,),
            in_specs=[
                pl.BlockSpec((1, Cin, H, W), lambda n: (n, 0, 0, 0)),
                pl.BlockSpec((Cout, 9 * Cin), lambda n: (0, 0)),   # resident
                pl.BlockSpec((Cout, 1), lambda n: (0, 0)),         # resident
            ],
            out_specs=pl.BlockSpec((1, Cout, H * W), lambda n: (n, 0, 0)),
        ),
        compiler_params=pltpu.CompilerParams(
            dimension_semantics=("parallel",),
        ),
    )(x_c, w_c, b2)

    # Free reshape (no transpose): (N, Cout, H*W) -> (N, Cout, H, W).
    return out_flat.reshape(N, Cout, H, W)


if __name__ == "__main__":
    key = jax.random.PRNGKey(0)
    k_x, k_w, k_b = jax.random.split(key, 3)

    N, Cin, H, W = 2, 4, 16, 16
    Cout = 8

    x = jax.random.normal(k_x, (N, Cin, H, W), dtype=jnp.float32)

    # Deterministic synthetic parameters (PyTorch-style uniform fan_in init).
    fan_in = Cin * 3 * 3
    bound = 1.0 / (fan_in ** 0.5)
    weight = jax.random.uniform(k_w, (Cout, Cin, 3, 3), jnp.float32, -bound, bound)
    bias = jax.random.uniform(k_b, (Cout,), jnp.float32, -bound, bound)

    out = jax.jit(downsample_forward)(x, weight, bias)
    out = jax.block_until_ready(out)
    assert out.shape == (N, Cout, H, W)

    # Reference: same conv (WITH bias this time) computed by XLA on the same
    # bf16-rounded operands the kernel multiplies, accumulated in f32 — so the
    # only difference from the kernel is f32 summation order.
    xr = x.astype(jnp.bfloat16).astype(jnp.float32)
    wr = weight.astype(jnp.bfloat16).astype(jnp.float32)
    ref = lax.conv_general_dilated(
        xr, wr, window_strides=(1, 1), padding=((1, 1), (1, 1)),
        dimension_numbers=("NCHW", "OIHW", "NCHW"),
    ) + bias.reshape(1, Cout, 1, 1)

    max_err = float(jnp.max(jnp.abs(out - ref)))
    assert jnp.allclose(out, ref, atol=2e-3, rtol=2e-3), max_err

    print("KERNEL_OK")
</pallas_src>

<mosaic_0001>
module attributes {stable_mosaic.version = 11 : i64} {
  func.func @_conv3x3_kernel(%arg0: i32, %arg1: memref<1x4x16x16xbf16, #tpu.memory_space<vmem>>, %arg2: memref<8x36xbf16, #tpu.memory_space<vmem>>, %arg3: memref<8x1xf32, #tpu.memory_space<vmem>>, %arg4: memref<1x8x256xf32, #tpu.memory_space<vmem>>) attributes {dimension_semantics = [#tpu.dimension_semantics<parallel>], iteration_bounds = array<i64: 2>, scalar_prefetch = 0 : i64, scratch_operands = 0 : i64, tpu.core_type = #tpu.core_type<tc>, window_params = [{transform_indices = @transform_0, window_bounds = array<i64: 1, 4, 16, 16>}, {pipeline_mode = #tpu.pipeline_mode<synchronous>, transform_indices = @transform_1, window_bounds = array<i64: 8, 36>}, {pipeline_mode = #tpu.pipeline_mode<synchronous>, transform_indices = @transform_2, window_bounds = array<i64: 8, 1>}, {transform_indices = @transform_3, window_bounds = array<i64: 1, 8, 256>}]} {
    %c0 = arith.constant 0 : index
    %c0_0 = arith.constant 0 : index
    %c0_1 = arith.constant 0 : index
    %c0_2 = arith.constant 0 : index
    %0 = vector.load %arg1[%c0, %c0_0, %c0_1, %c0_2] : memref<1x4x16x16xbf16, #tpu.memory_space<vmem>>, vector<1x4x16x16xbf16>
    %1 = vector.shape_cast %0 : vector<1x4x16x16xbf16> to vector<4x16x16xbf16>
    %cst = arith.constant 0.000000e+00 : bf16
    %2 = vector.broadcast %cst : bf16 to vector<4x1x16xbf16>
    %3 = tpu.concatenate %2, %1, %2 in 1 : vector<4x1x16xbf16>, vector<4x16x16xbf16>, vector<4x1x16xbf16> -> vector<4x18x16xbf16>
    %cst_3 = arith.constant 0.000000e+00 : bf16
    %4 = vector.broadcast %cst_3 : bf16 to vector<4x18x1xbf16>
    %5 = tpu.concatenate %4, %3, %4 in 2 : vector<4x18x1xbf16>, vector<4x18x16xbf16>, vector<4x18x1xbf16> -> vector<4x18x18xbf16>
    %6 = vector.extract_strided_slice %5 {offsets = [0, 0, 0], sizes = [4, 16, 16], strides = [1, 1, 1]} : vector<4x18x18xbf16> to vector<4x16x16xbf16>
    %7 = vector.shape_cast %6 : vector<4x16x16xbf16> to vector<4x256xbf16>
    %8 = vector.extract_strided_slice %5 {offsets = [0, 0, 1], sizes = [4, 16, 16], strides = [1, 1, 1]} : vector<4x18x18xbf16> to vector<4x16x16xbf16>
    %9 = vector.shape_cast %8 : vector<4x16x16xbf16> to vector<4x256xbf16>
    %10 = vector.extract_strided_slice %5 {offsets = [0, 0, 2], sizes = [4, 16, 16], strides = [1, 1, 1]} : vector<4x18x18xbf16> to vector<4x16x16xbf16>
    %11 = vector.shape_cast %10 : vector<4x16x16xbf16> to vector<4x256xbf16>
    %12 = vector.extract_strided_slice %5 {offsets = [0, 1, 0], sizes = [4, 16, 16], strides = [1, 1, 1]} : vector<4x18x18xbf16> to vector<4x16x16xbf16>
    %13 = vector.shape_cast %12 : vector<4x16x16xbf16> to vector<4x256xbf16>
    %14 = vector.extract_strided_slice %5 {offsets = [0, 1, 1], sizes = [4, 16, 16], strides = [1, 1, 1]} : vector<4x18x18xbf16> to vector<4x16x16xbf16>
    %15 = vector.shape_cast %14 : vector<4x16x16xbf16> to vector<4x256xbf16>
    %16 = vector.extract_strided_slice %5 {offsets = [0, 1, 2], sizes = [4, 16, 16], strides = [1, 1, 1]} : vector<4x18x18xbf16> to vector<4x16x16xbf16>
    %17 = vector.shape_cast %16 : vector<4x16x16xbf16> to vector<4x256xbf16>
    %18 = vector.extract_strided_slice %5 {offsets = [0, 2, 0], sizes = [4, 16, 16], strides = [1, 1, 1]} : vector<4x18x18xbf16> to vector<4x16x16xbf16>
    %19 = vector.shape_cast %18 : vector<4x16x16xbf16> to vector<4x256xbf16>
    %20 = vector.extract_strided_slice %5 {offsets = [0, 2, 1], sizes = [4, 16, 16], strides = [1, 1, 1]} : vector<4x18x18xbf16> to vector<4x16x16xbf16>
    %21 = vector.shape_cast %20 : vector<4x16x16xbf16> to vector<4x256xbf16>
    %22 = vector.extract_strided_slice %5 {offsets = [0, 2, 2], sizes = [4, 16, 16], strides = [1, 1, 1]} : vector<4x18x18xbf16> to vector<4x16x16xbf16>
    %23 = vector.shape_cast %22 : vector<4x16x16xbf16> to vector<4x256xbf16>
    %24 = tpu.concatenate %7, %9, %11, %13, %15, %17, %19, %21, %23 in 0 : vector<4x256xbf16>, vector<4x256xbf16>, vector<4x256xbf16>, vector<4x256xbf16>, vector<4x256xbf16>, vector<4x256xbf16>, vector<4x256xbf16>, vector<4x256xbf16>, vector<4x256xbf16> -> vector<36x256xbf16>
    %c0_4 = arith.constant 0 : index
    %c0_5 = arith.constant 0 : index
    %25 = vector.load %arg2[%c0_4, %c0_5] : memref<8x36xbf16, #tpu.memory_space<vmem>>, vector<8x36xbf16>
    %cst_6 = arith.constant dense<0.000000e+00> : vector<8x256xf32>
    %26 = tpu.matmul %25, %24, %cst_6 {dimension_numbers = #tpu.dot_dimension_numbers<[1], [0], [0], [1], [0, 0, 1, 1], [], []>} : vector<8x36xbf16>, vector<36x256xbf16>, vector<8x256xf32> -> vector<8x256xf32>
    %c0_7 = arith.constant 0 : index
    %c0_8 = arith.constant 0 : index
    %27 = vector.load %arg3[%c0_7, %c0_8] : memref<8x1xf32, #tpu.memory_space<vmem>>, vector<8x1xf32>
    %28 = vector.broadcast %27 : vector<8x1xf32> to vector<8x256xf32>
    %29 = arith.addf %26, %28 : vector<8x256xf32>
    %c0_9 = arith.constant 0 : index
    %c0_10 = arith.constant 0 : index
    %c0_11 = arith.constant 0 : index
    %30 = vector.load %arg4[%c0_9, %c0_10, %c0_11] : memref<1x8x256xf32, #tpu.memory_space<vmem>>, vector<1x8x256xf32>
    %31 = vector.shape_cast %30 : vector<1x8x256xf32> to vector<8x256xf32>
    %32 = vector.shape_cast %29 : vector<8x256xf32> to vector<1x8x256xf32>
    tpu.vector_store %arg4[%c0_9, %c0_10, %c0_11], %32 {strides = array<i32>} : memref<1x8x256xf32, #tpu.memory_space<vmem>>, vector<1x8x256xf32>,
    return
  }
  func.func @transform_0(%arg0: i32) -> (i32, i32, i32, i32) {
    %c0_i32 = arith.constant 0 : i32
    %c0_i32_0 = arith.constant 0 : i32
    %c0_i32_1 = arith.constant 0 : i32
    %c0_i32_2 = arith.constant 0 : i32
    return %arg0, %c0_i32, %c0_i32_0, %c0_i32_1 : i32, i32, i32, i32
  }
  func.func @transform_1(%arg0: i32) -> (i32, i32) {
    %c0_i32 = arith.constant 0 : i32
    %c0_i32_0 = arith.constant 0 : i32
    %c0_i32_1 = arith.constant 0 : i32
    return %c0_i32, %c0_i32_0 : i32, i32
  }
  func.func @transform_2(%arg0: i32) -> (i32, i32) {
    %c0_i32 = arith.constant 0 : i32
    %c0_i32_0 = arith.constant 0 : i32
    %c0_i32_1 = arith.constant 0 : i32
    return %c0_i32, %c0_i32_0 : i32, i32
  }
  func.func @transform_3(%arg0: i32) -> (i32, i32, i32) {
    %c0_i32 = arith.constant 0 : i32
    %c0_i32_0 = arith.constant 0 : i32
    %c0_i32_1 = arith.constant 0 : i32
    return %arg0, %c0_i32, %c0_i32_0 : i32, i32, i32
  }
}

</mosaic_0001>

<bundles_post_ra>
// kernel: downsample_forward.1
= control target key start
LH: loop header
LB: loop body
LE: loop exit
PB: predicated region body
PF: predicated region fallthrough
CT: control target
= control target key end

     0   :  { %s2646_s12 = smov 0   ;;  %s3819_s0 = inlined_call_operand.vmem [shape: bf16[2,4,16,16], index: 0, kind: input, shape index: {}]   ;;  %s3820_s1 = inlined_call_operand.vmem [shape: bf16[8,36], index: 1, kind: input, shape index: {}]   ;;  %s3821_s2 = inlined_call_operand.vmem [shape: f32[8,1], index: 2, kind: input, shape index: {}]   ;;  %s3822_s3 = inlined_call_operand.vmem [shape: f32[2,8,256], index: 3, kind: output, shape index: {}]  }
   0x1 LB: > { %s2560_s13 = sadd.s32 4294967295, %s2611_s12   ;;  %p2564_p0 = scmp.ge.s32.totalorder %s2611_s12, 1  ;;  %s2611_s12 = sphi %s2646_s12, %s13_s12  }
   0x2   : > { %p137_p1 = scmp.lt.s32.totalorder %s2611_s12, 3 }
   0x4   : > { %p138_p2 = pnand %p2564_p0, %p137_p1 }
   0x6   : > { %141 = sbr.rel (%p138_p2) target bundleno = 790 (0x316), region = 32 }
   0xd   : > { %p161_p3 = scmp.lt.s32.totalorder %s2560_s13, 1  ;;  %vm236_vm0 = vcmask 1040384   ;;  %vm237_vm1 = vsmask.f32 256  ;;  %s2613_s18 = smov 1   ;;  %v3824_v23 = vmov 0  }
   0xe   : > { %vm2660_vm2 = vmand %vm236_vm0, %vm237_vm1  ;;  %2494 = vmatprep.mubr.bf16.mxu0 %v3824_v23  ;;  %2600 = vset.pattern.permute.xlu0 %v3824_v23  ;;  %vm271_vm3 = vcmask 7168   ;;  %vm289_vm4 = vcmask 138240   ;;  %s2615_s19 = smov 127   ;;  %s2616_s20 = smov 126   ;;  %vm1703_vm5 = vcmask 1046528   ;;  %vm489_vm7 = vcmask 130048  }
   0xf   : > { %s3874_s13 = smov (!%p161_p3, %s2560_s13), 1  ;;  %vm986_vm6 = vsmask.f32 7424  ;;  %s2619_s21 = smov 64   ;;  %vm493_vm8 = vcmask 261120   ;;  %vm496_vm9 = vcmask 392192  }
  0x10   : > { %s2577_s14 = sshll.u32 %s3874_s13, 5  ;;  %s2620_s22 = smov 16   ;;  %vm499_vm10 = vcmask 523264   ;;  %vm502_vm11 = vcmask 654336   ;;  %vm505_vm12 = vcmask 785408   ;;  %vm508_vm13 = vcmask 916480  }
  0x11   : > { %s165_s17 = scalar_lea.vmem %s3819_s0, %s2577_s14  ;;  %s2621_s23 = smov 96   ;;  %vm2416_vm14 = vcmask 1041408   ;;  %vm2421_vm15 = vcmask 1043456   ;;  %vm2426_vm0 = vcmask 1045504   ;;  %vm2454_vm1 = vcmask 293888  }
  0x12   : > { %v2601_v1 = vld [vmem:[%s165_s17 + $0x8] sm:$0xff]   ;;  %v2602_v2 = vld [vmem:[%s165_s17] sm:$0xff]   ;;  %v2603_v4 = vld [vmem:[%s165_s17 + $0x18] sm:$0xff]   ;;  %s2622_s24 = smov 32   ;;  %s2623_s25 = smov 48  }
  0x13   : > { %v208_v3 = vshrl.u32 %v2601_v1, 16  ;;  %v201_v5 = vshrl.u32 %v2602_v2, 16  ;;  %v2604_v6 = vld [vmem:[%s165_s17 + $0x10] sm:$0xff]   ;;  %v222_v8 = vshrl.u32 %v2603_v4, 16  ;;  %v204_v12 = vshll.u32 %v2602_v2, 16  ;;  %s2624_s26 = smov 80  }
  0x14   : > { %v215_v10 = vshrl.u32 %v2604_v6, 16  ;;  %v218_v11 = vshll.u32 %v2604_v6, 16  ;;  %v225_v18 = vshll.u32 %v2603_v4, 16  ;;  %v211_v22 = vshll.u32 %v2601_v1, 16  ;;  %s2625_s27 = smov 112   ;;  %s2578_s5 = sshll.u32 %s3874_s13, 4 }
  0x15   : > { %v210_v7 = vrot.slane %v208_v3, 7  ;;  %v203_v9 = vrot.slane %v201_v5, 7  ;;  %v224_v14 = vrot.slane %v222_v8, 7  ;;  %s170_s8 = scalar_lea.vmem %s3822_s3, %s2578_s5 }
  0x16   : > { %v217_v16 = vrot.slane %v215_v10, 7 }
  0x17   : > { %v244_v13 = vsel %vm2660_vm2, %v210_v7, 0  ;;  %v243_v15 = vsel %vm2660_vm2, %v203_v9, 0  ;;  %v246_v17 = vsel %vm2660_vm2, %v224_v14, 0  ;;  %v206_v21 = vor.u32 %v204_v12, %v203_v9 }
  0x18   : > { %261 = vrot.lane.b32.xlu1 %v244_v13, %s2613_s18  ;;  %257 = vrot.lane.b32.xlu0 %v243_v15, %s2613_s18  ;;  %v245_v19 = vsel %vm2660_vm2, %v217_v16, 0  ;;  %v220_v20 = vor.u32 %v218_v11, %v217_v16  ;;  %v227_v25 = vor.u32 %v225_v18, %v224_v14  ;;  %v213_v27 = vor.u32 %v211_v22, %v210_v7 }
  0x19   : > { %v239_v26 = vsel %vm2660_vm2, 0, %v206_v21  ;;  %v2617_v9 = vmov 1983009808   ;;  %v319_v11 = vlaneseq }
  0x1a   : > { %v241_v24 = vsel %vm2660_vm2, 0, %v220_v20  ;;  %v242_v28 = vsel %vm2660_vm2, 0, %v227_v25  ;;  %v240_v29 = vsel %vm2660_vm2, 0, %v213_v27  ;;  %v317_v10 = vunpack.c.l.s4 %v2617_v9 }
  0x1b   : > { %v320_v21 = vshrl.u32 %v319_v11, 7  ;;  %v2618_v27 = vmov 1934713408  }
  0x1c   : > { %269 = vrot.lane.b32.xlu1 %v246_v17, %s2613_s18  ;;  %265 = vrot.lane.b32.xlu0 %v245_v19, %s2613_s18  ;;  %v318_v20 = vunpack.c.0.s8 %v317_v10 }
  0x20   : > { %263 = vrot.lane.b32.xlu1 %v241_v24, %s2613_s18  ;;  %255 = vrot.lane.b32.xlu0 %v239_v26, %s2613_s18 }
  0x24   : > { %267 = vrot.lane.b32.xlu1 %v242_v28, %s2613_s18  ;;  %259 = vrot.lane.b32.xlu0 %v240_v29, %s2613_s18  ;;  %v348_v28 = vunpack.c.l.s4 %v2618_v27 }
  0x8a   : > { %v262_v30 = vpop.permute.xlu1 %261  ;;  %v258_v31 = vpop.permute.xlu0 %257 }
  0x8b   : > { %v276_v45 = vsel %vm271_vm3, 0, %v258_v31  ;;  %v280_v48 = vsel %vm271_vm3, 0, %v262_v30 }
  0x8c   : > { %v291_v47 = vsel %vm289_vm4, %v276_v45, 0  ;;  %v293_v52 = vsel %vm289_vm4, %v280_v48, 0 }
  0x8d   : > { %v1705_v51 = vrot.slane %v291_v47, 1  ;;  %v1708_v58 = vrot.slane %v293_v52, 1  ;;  %v992_v6 = vshll.u32 %v291_v47, 16  ;;  %v1001_v16 = vshll.u32 %v293_v52, 16 }
  0x8e   : > { %v270_v32 = vpop.permute.xlu1 %269  ;;  %v266_v33 = vpop.permute.xlu0 %265 }
  0x8f   : > { %v284_v49 = vsel %vm271_vm3, 0, %v266_v33  ;;  %v288_v54 = vsel %vm271_vm3, 0, %v270_v32  ;;  %v994_v17 = vrot.slane %v992_v6, 1  ;;  %v1003_v29 = vrot.slane %v1001_v16, 1 }
  0x90   : > { %v295_v53 = vsel %vm289_vm4, %v284_v49, 0  ;;  %v297_v60 = vsel %vm289_vm4, %v288_v54, 0  ;;  %v2769_v33 = vpack.i.b16 %v3824_v23, %v3824_v23 }
  0x91   : > { %v1711_v59 = vrot.slane %v295_v53, 1  ;;  %v1714_v1 = vrot.slane %v297_v60, 1  ;;  %v1010_v18 = vshll.u32 %v295_v53, 16  ;;  %v1019_v30 = vshll.u32 %v297_v60, 16 }
  0x92   : > { %v264_v34 = vpop.permute.xlu1 %263  ;;  %v256_v35 = vpop.permute.xlu0 %255 }
  0x93   : > { %v274_v36 = vsel %vm271_vm3, 0, %v256_v35  ;;  %v282_v38 = vsel %vm271_vm3, 0, %v264_v34  ;;  %v1012_v31 = vrot.slane %v1010_v18, 1 }
  0x94   : > { %v2684_v37 = vsel %vm289_vm4, %v274_v36, 0  ;;  %v2691_v42 = vsel %vm289_vm4, %v282_v38, 0  ;;  %v2775_v36 = vsub.s32 %v318_v20, %v320_v21 }
  0x95   : > { %530 = vrot.lane.b32.xlu0 %v2684_v37, %s2615_s19  ;;  %v1704_v50 = vrot.slane %v2684_v37, 1  ;;  %v1710_v56 = vrot.slane %v2691_v42, 1  ;;  %v988_v0 = vshll.u32 %v2684_v37, 16  ;;  %v1006_v4 = vshll.u32 %v2691_v42, 16 }
  0x96   : > { %v268_v39 = vpop.permute.xlu1 %267  ;;  %v260_v40 = vpop.permute.xlu0 %259  ;;  %v300_v7 = vshrl.u32 %v2684_v37, 16  ;;  %v306_v8 = vshrl.u32 %v2691_v42, 16 }
  0x97   : > { %v278_v41 = vsel %vm271_vm3, 0, %v260_v40  ;;  %v286_v44 = vsel %vm271_vm3, 0, %v268_v39  ;;  %v2721_v55 = vsel %vm1703_vm5, %v1704_v50, %v1705_v51  ;;  %v2731_v61 = vsel %vm1703_vm5, %v1710_v56, %v1711_v59 }
  0x98   : > { %v2694_v43 = vsel %vm289_vm4, %v278_v41, 0  ;;  %v2703_v46 = vsel %vm289_vm4, %v286_v44, 0  ;;  %v990_v3 = vrot.slane %v988_v0, 1  ;;  %v1008_v13 = vrot.slane %v1006_v4, 1 }
  0x99   : > { %534 = vrot.lane.b32.xlu0 %v2691_v42, %s2615_s19  ;;  %532 = vrot.lane.b32.xlu1 %v2694_v43, %s2615_s19  ;;  %v1707_v57 = vrot.slane %v2694_v43, 1  ;;  %v1713_v63 = vrot.slane %v2703_v46, 1  ;;  %v997_v5 = vshll.u32 %v2694_v43, 16  ;;  %v1015_v15 = vshll.u32 %v2703_v46, 16 }
  0x9a   : > { %v991_v12 = vor.u32 %v990_v3, %v300_v7  ;;  %v301_v19 = vshrl.u32 %v2694_v43, 16  ;;  %v1009_v24 = vor.u32 %v1008_v13, %v306_v8  ;;  %v307_v32 = vshrl.u32 %v2703_v46, 16 }
  0x9b   : > { %v2734_v62 = vsel %vm1703_vm5, %v1707_v57, %v1708_v58  ;;  %v2743_v2 = vsel %vm1703_vm5, %v1713_v63, %v1714_v1  ;;  %v999_v14 = vrot.slane %v997_v5, 1  ;;  %v1017_v26 = vrot.slane %v1015_v15, 1 }
  0x9c   : > { %v2760_v22 = vsel %vm986_vm6, %v991_v12, %v994_v17  ;;  %v298_v34 = vpack.i.b16 %v2694_v43, %v2684_v37  ;;  %v304_v35 = vpack.i.b16 %v2703_v46, %v2691_v42  ;;  %v2778_v38 = vsel %vm986_vm6, %v1009_v24, %v1012_v31 }
  0x9d   : > { %758 = vrot.lane.b32.xlu0 %v2684_v37, %s2616_s20  ;;  %536 = vrot.lane.b32.xlu1 %v2703_v46, %s2615_s19  ;;  %v1000_v25 = vor.u32 %v999_v14, %v301_v19  ;;  %v1018_v40 = vor.u32 %v1017_v26, %v307_v32  ;;  %v1021_v41 = vrot.slane %v1019_v30, 1  ;;  %v349_v37 = vunpack.c.0.s8 %v348_v28 }
  0x9e   : > { %v308_v44 = vpack.i.b16 %v307_v32, %v306_v8  ;;  %v337_v45 = vrot.slane %v304_v35, %v2775_v36  ;;  %v330_v47 = vcombine.high %v304_v35, %v2769_v33  ;;  %v1726_v5 = vpack.i.b16 %v2743_v2, %v2731_v61 }
  0x9f   : > { %v2781_v39 = vsel %vm986_vm6, %v1000_v25, %v1003_v29  ;;  %v2792_v48 = vsel %vm986_vm6, %v1018_v40, %v1021_v41  ;;  %v2800_v52 = vsub.s32 %v349_v37, %v320_v21  ;;  %v1718_v6 = vpack.i.b16 %v2734_v62, %v2721_v55 }
  0xa0   : > { %v403_v50 = vrot.slane %v308_v44, %v2775_v36  ;;  %v344_v54 = vrot.slane %v330_v47, %v2775_v36  ;;  %v396_v4 = vcombine.high %v308_v44, %v2769_v33  ;;  %v1729_v8 = vshrl.u32 %v2743_v2, 16 }
  0xa1   : > { %762 = vrot.lane.b32.xlu0 %v2691_v42, %s2616_s20  ;;  %760 = vrot.lane.b32.xlu1 %v2694_v43, %s2616_s20  ;;  %v302_v43 = vpack.i.b16 %v301_v19, %v300_v7  ;;  %v322_v42 = vrot.slane %v298_v34, %v2775_v36  ;;  %v1721_v7 = vshrl.u32 %v2734_v62, 16  ;;  %v1720_v14 = vshrl.u32 %v2721_v55, 16 }
  0xa2   : > { %v410_v13 = vrot.slane %v396_v4, %v2775_v36  ;;  %v1728_v15 = vshrl.u32 %v2731_v61, 16  ;;  %v1739_v17 = vrot.slane %v1718_v6, %v2775_v36  ;;  %v1754_v21 = vrot.slane %v1726_v5, %v2775_v36 }
  0xa3   : > { %v388_v49 = vrot.slane %v302_v43, %v2775_v36  ;;  %v346_v51 = vcombine.high %v322_v42, %v337_v45  ;;  %v345_v57 = vcombine.low %v322_v42, %v337_v45  ;;  %v381_v3 = vcombine.high %v302_v43, %v2769_v33 }
  0xa4   : > { %v1763_v24 = vcombine.high %v1739_v17, %v1754_v21  ;;  %v1732_v27 = vcombine.high %v1718_v6, %v2769_v33  ;;  %v1747_v28 = vcombine.high %v1726_v5, %v2769_v33  ;;  %v1025_v44 = vpack.i.b16 %v2781_v39, %v2760_v22 }
  0xa5   : > { %1936 = vrot.lane.b32.xlu0 %v2721_v55, %s2615_s19  ;;  %764 = vrot.lane.b32.xlu1 %v2703_v46, %s2616_s20  ;;  %v315_v46 = vcombine.high %v298_v34, %v2769_v33  ;;  %v411_v56 = vcombine.low %v388_v49, %v403_v50  ;;  %v360_v58 = vrot.slane %v346_v51, %v2800_v52 }
  0xa6   : > { %v2814_v63 = vrot.slane %v345_v57, %v2800_v52  ;;  %v395_v12 = vrot.slane %v381_v3, %v2775_v36  ;;  %v412_v16 = vcombine.high %v388_v49, %v403_v50  ;;  %v1777_v30 = vrot.slane %v1763_v24, %v2800_v52 }
  0xa7   : > { %v329_v53 = vrot.slane %v315_v46, %v2775_v36  ;;  %v419_v60 = vrot.slane %v411_v56, %v2800_v52  ;;  %v378_v0 = vcombine.high %v360_v58, %v3824_v23  ;;  %v1762_v34 = vcombine.low %v1739_v17, %v1754_v21 }
  0xa8   : > { %v377_v9 = vcombine.high %v2814_v63, %v3824_v23  ;;  %v428_v20 = vcombine.high %v395_v12, %v410_v13  ;;  %v427_v29 = vcombine.low %v395_v12, %v410_v13  ;;  %v1746_v37 = vrot.slane %v1732_v27, %v2775_v36 }
  0xa9   : > { %1940 = vrot.lane.b32.xlu0 %v2731_v61, %s2615_s19  ;;  %1938 = vrot.lane.b32.xlu1 %v2734_v62, %s2615_s19  ;;  %v361_v59 = vcombine.low %v329_v53, %v344_v54  ;;  %v362_v11 = vcombine.high %v329_v53, %v344_v54  ;;  %v443_v19 = vcombine.high %v419_v60, %v3824_v23 }
  0xaa   : > { %v435_v35 = vrot.slane %v427_v29, %v2800_v52  ;;  %v2861_v41 = vrot.slane %v1762_v34, %v2800_v52  ;;  %v1761_v43 = vrot.slane %v1747_v28, %v2775_v36  ;;  %v1033_v45 = vpack.i.b16 %v2792_v48, %v2778_v38 }
  0xab   : > { %v2818_v1 = vrot.slane %v361_v59, %v2800_v52  ;;  %v376_v18 = vrot.slane %v362_v11, %v2800_v52  ;;  %v1046_v51 = vrot.slane %v1025_v44, %v2775_v36  ;;  %v1036_v59 = vshrl.u32 %v2792_v48, 16 }
  0xac   : > { %3835 = vst [vmem:[#allocation3_spill] sm:$0xff] %v2861_v41  ;;  %v1794_v47 = vcombine.high %v2861_v41, %v3824_v23  ;;  %v1779_v49 = vcombine.high %v1746_v37, %v1761_v43  ;;  %v1061_v54 = vrot.slane %v1033_v45, %v2775_v36  ;;  %v1778_v4 = vcombine.low %v1746_v37, %v1761_v43 }
  0xad   : > { %2164 = vrot.lane.b32.xlu0 %v2721_v55, %s2616_s20  ;;  %1942 = vrot.lane.b32.xlu1 %v2743_v2, %s2615_s19  ;;  %3834 = vst [vmem:[#allocation2_spill] sm:$0xff] %v2818_v1  ;;  %v379_v10 = vcombine.high %v2818_v1, %v3824_v23  ;;  %v426_v55 = vrot.slane %v412_v16, %v2800_v52 }
  0xae   : > { %v380_v31 = vcombine.high %v376_v18, %v3824_v23  ;;  %v1793_v53 = vrot.slane %v1779_v49, %v2800_v52  ;;  %v1070_v3 = vcombine.high %v1046_v51, %v1061_v54  ;;  %v2900_v11 = vrot.slane %v1778_v4, %v2800_v52 }
  0xaf   : > { %v444_v46 = vcombine.high %v426_v55, %v3824_v23  ;;  %v1069_v17 = vcombine.low %v1046_v51, %v1061_v54 }
  0xb0   : > { %v1796_v13 = vcombine.high %v2900_v11, %v3824_v23 }
  0xb1   : > { %2168 = vrot.lane.b32.xlu0 %v2731_v61, %s2616_s20  ;;  %2166 = vrot.lane.b32.xlu1 %v2734_v62, %s2616_s20  ;;  %v1722_v62 = vpack.i.b16 %v1721_v7, %v1720_v14  ;;  %v442_v61 = vrot.slane %v428_v20, %v2800_v52  ;;  %v1027_v7 = vshrl.u32 %v2760_v22, 16  ;;  %v2922_v24 = vrot.slane %v1069_v17, %v2800_v52 }
  0xb3   : > { %v1805_v25 = vrot.slane %v1722_v62, %v2775_v36  ;;  %v1798_v56 = vcombine.high %v1722_v62, %v2769_v33  ;;  %v1039_v62 = vcombine.high %v1025_v44, %v2769_v33 }
  0xb5   : > { %1471 = vrot.lane.b32.xlu0 %v2760_v22, %s2616_s20  ;;  %2170 = vrot.lane.b32.xlu1 %v2743_v2, %s2616_s20  ;;  %v1730_v2 = vpack.i.b16 %v1729_v8, %v1728_v15  ;;  %v1812_v5 = vrot.slane %v1798_v56, %v2775_v36  ;;  %v1035_v8 = vshrl.u32 %v2778_v38, 16 }
  0xb7   : > { %v1820_v26 = vrot.slane %v1730_v2, %v2775_v36  ;;  %v1813_v57 = vcombine.high %v1730_v2, %v2769_v33  ;;  %v1054_v2 = vcombine.high %v1033_v45, %v2769_v33 }
  0xb9   : > { %1475 = vrot.lane.b32.xlu0 %v2778_v38, %s2616_s20  ;;  %1473 = vrot.lane.b32.xlu1 %v2781_v39, %s2616_s20  ;;  %v1828_v32 = vcombine.low %v1805_v25, %v1820_v26  ;;  %v1829_v42 = vcombine.high %v1805_v25, %v1820_v26  ;;  %v1827_v6 = vrot.slane %v1813_v57, %v2775_v36 }
  0xba   : > { %v1053_v26 = vrot.slane %v1039_v62, %v2775_v36  ;;  %v1068_v27 = vrot.slane %v1054_v2, %v2775_v36 }
  0xbb   : > { %v1836_v40 = vrot.slane %v1828_v32, %v2800_v52  ;;  %v2877_v50 = vrot.slane %v1829_v42, %v2800_v52  ;;  %v1844_v12 = vcombine.low %v1812_v5, %v1827_v6  ;;  %v1845_v15 = vcombine.high %v1812_v5, %v1827_v6 }
  0xbc   : > { %v1086_v32 = vcombine.high %v1053_v26, %v1068_v27 }
  0xbd   : > { %1243 = vrot.lane.b32.xlu0 %v2760_v22, %s2615_s19  ;;  %1477 = vrot.lane.b32.xlu1 %v2792_v48, %s2616_s20  ;;  %v1852_v14 = vrot.slane %v1844_v12, %v2800_v52 }
  0xbf   : > { %v1862_v44 = vcombine.high %v1852_v14, %v3824_v23 }
  0xc1   : > { %1247 = vrot.lane.b32.xlu0 %v2778_v38, %s2615_s19  ;;  %1245 = vrot.lane.b32.xlu1 %v2781_v39, %s2615_s19 }
  0xc5   : > { %1249 = vrot.lane.b32.xlu1 %v2792_v48, %s2615_s19  ;;  %457 = vrot.lane.b32.xlu0 %v360_v58, %s2619_s21  ;;  %v1028_v58 = vshrl.u32 %v2781_v39, 16  ;;  %v1037_v48 = vpack.i.b16 %v1036_v59, %v1035_v8 }
  0xc7   : > { %v1029_v39 = vpack.i.b16 %v1028_v58, %v1027_v7  ;;  %v1127_v38 = vrot.slane %v1037_v48, %v2775_v36  ;;  %v1120_v21 = vcombine.high %v1037_v48, %v2769_v33 }
  0xc9   : > { %448 = vrot.lane.b32.xlu0 %v419_v60, %s2620_s22  ;;  %463 = vrot.lane.b32.xlu1 %v378_v0, %s2621_s23  ;;  %v446_v60 = vcombine.high %v442_v61, %v3824_v23  ;;  %v1795_v0 = vcombine.high %v1777_v30, %v3824_v23  ;;  %v1112_v22 = vrot.slane %v1029_v39, %v2775_v36 }
  0xca   : > { %v1105_v20 = vcombine.high %v1029_v39, %v2769_v33  ;;  %v1134_v29 = vrot.slane %v1120_v21, %v2775_v36 }
  0xcb   : > { %v1135_v16 = vcombine.low %v1112_v22, %v1127_v38  ;;  %v1136_v25 = vcombine.high %v1112_v22, %v1127_v38 }
  0xcc   : > { %v1119_v28 = vrot.slane %v1105_v20, %v2775_v36 }
  0xcd   : > { %451 = vrot.lane.b32.xlu0 %v377_v9, %s2622_s24  ;;  %472 = vrot.lane.b32.xlu1 %v379_v10, %s2622_s24  ;;  %v1084_v9 = vrot.slane %v1070_v3, %v2800_v52  ;;  %v445_v10 = vcombine.high %v435_v35, %v3824_v23 }
  0xce   : > { %v1151_v34 = vcombine.low %v1119_v28, %v1134_v29  ;;  %v1152_v49 = vcombine.high %v1119_v28, %v1134_v29 }
  0xd0   : > { %v1159_v37 = vrot.slane %v1151_v34, %v2800_v52  ;;  %v1166_v56 = vrot.slane %v1152_v49, %v2800_v52 }
  0xd1   : > { %478 = vrot.lane.b32.xlu0 %v376_v18, %s2619_s21  ;;  %454 = vrot.lane.b32.xlu1 %v443_v19, %s2623_s25  ;;  %v1860_v18 = vcombine.high %v1836_v40, %v3824_v23  ;;  %v1859_v19 = vrot.slane %v1845_v15, %v2800_v52 }
  0xd2   : > { %v1169_v39 = vcombine.high %v1159_v37, %v3824_v23  ;;  %v1170_v62 = vcombine.high %v1166_v56, %v3824_v23 }
  0xd3   : > { %v1863_v54 = vcombine.high %v1859_v19, %v3824_v23 }
  0xd5   : > { %460 = vrot.lane.b32.xlu0 %v426_v55, %s2624_s26  ;;  %481 = vrot.lane.b32.xlu1 %v442_v61, %s2624_s26  ;;  %v1143_v55 = vrot.slane %v1135_v16, %v2800_v52  ;;  %v1797_v61 = vcombine.high %v1793_v53, %v3824_v23 }
  0xd9   : > { %1874 = vrot.lane.b32.xlu0 %v1777_v30, %s2619_s21  ;;  %484 = vrot.lane.b32.xlu1 %v380_v31, %s2621_s23  ;;  %v1150_v30 = vrot.slane %v1136_v25, %v2800_v52  ;;  %v1101_v31 = vcombine.high %v2922_v24, %v3824_v23 }
  0xdd   : > { %469 = vrot.lane.b32.xlu0 %v435_v35, %s2620_s22  ;;  %1865 = vrot.lane.b32.xlu1 %v1836_v40, %s2620_s22  ;;  %v1085_v35 = vcombine.low %v1053_v26, %v1068_v27  ;;  %v1100_v40 = vrot.slane %v1086_v32, %v2800_v52 }
  0xdf   : > { %v2938_v43 = vrot.slane %v1085_v35, %v2800_v52 }
  0xe1   : > { %466 = vrot.lane.b32.xlu0 %v444_v46, %s2625_s27  ;;  %1868 = vrot.lane.b32.xlu1 %v1794_v47, %s2622_s24  ;;  %v1103_v42 = vcombine.high %v2938_v43, %v3824_v23  ;;  %v1102_v46 = vcombine.high %v1084_v9, %v3824_v23  ;;  %v1167_v47 = vcombine.high %v1143_v55, %v3824_v23 }
  0xe5   : > { %1877 = vrot.lane.b32.xlu0 %v2877_v50, %s2624_s26  ;;  %1895 = vrot.lane.b32.xlu1 %v1793_v53, %s2619_s21 }
  0xe9   : > { %487 = vrot.lane.b32.xlu0 %v446_v60, %s2625_s27  ;;  %1880 = vrot.lane.b32.xlu1 %v1795_v0, %s2621_s23  ;;  %v1104_v60 = vcombine.high %v1100_v40, %v3824_v23  ;;  %v1168_v0 = vcombine.high %v1150_v30, %v3824_v23 }
  0xed   : > { %1181 = vrot.lane.b32.xlu0 %v1084_v9, %s2619_s21  ;;  %475 = vrot.lane.b32.xlu1 %v445_v10, %s2623_s25 }
  0xf1   : > { %1889 = vrot.lane.b32.xlu0 %v1796_v13, %s2622_s24  ;;  %1886 = vrot.lane.b32.xlu1 %v1852_v14, %s2620_s22 }
  0xf5   : > { %1871 = vrot.lane.b32.xlu0 %v1860_v18, %s2623_s25  ;;  %1898 = vrot.lane.b32.xlu1 %v1859_v19, %s2624_s26 }
  0xf9   : > { %1172 = vrot.lane.b32.xlu0 %v1143_v55, %s2620_s22  ;;  %1901 = vrot.lane.b32.xlu1 %v1797_v61, %s2621_s23 }
  0xfd   : > { %1175 = vrot.lane.b32.xlu0 %v1101_v31, %s2622_s24  ;;  %1184 = vrot.lane.b32.xlu1 %v1150_v30, %s2624_s26 }
 0x101   : > { %1202 = vrot.lane.b32.xlu0 %v1100_v40, %s2619_s21  ;;  %1193 = vrot.lane.b32.xlu1 %v1159_v37, %s2620_s22 }
 0x105   : > { %1892 = vrot.lane.b32.xlu0 %v1862_v44, %s2623_s25  ;;  %1196 = vrot.lane.b32.xlu1 %v1103_v42, %s2622_s24 }
 0x107   : > { %v531_v45 = vpop.permute.xlu0 %530 }
 0x108   : > { %v542_v22 = vshrl.u32 %v531_v45, 16 }
 0x109   : > { %1187 = vrot.lane.b32.xlu0 %v1102_v46, %s2621_s23  ;;  %1178 = vrot.lane.b32.xlu1 %v1167_v47, %s2623_s25 }
 0x10b   : > { %v533_v51 = vpop.permute.xlu1 %532  ;;  %v535_v53 = vpop.permute.xlu0 %534 }
 0x10c   : > { %v2955_v57 = vpack.i.b16 %v533_v51, %v531_v45  ;;  %v543_v48 = vshrl.u32 %v533_v51, 16  ;;  %v550_v9 = vshrl.u32 %v535_v53, 16 }
 0x10d   : > { %1904 = vrot.lane.b32.xlu0 %v1863_v54, %s2625_s27  ;;  %1205 = vrot.lane.b32.xlu1 %v1166_v56, %s2624_s26 }
 0x10e   : > { %v561_v5 = vrot.slane %v2955_v57, %v2775_v36  ;;  %v2975_v16 = vpack.i.b16 %v543_v48, %v542_v22 }
 0x10f   : > { %v537_v58 = vpop.permute.xlu1 %536  ;;  %v759_v59 = vpop.permute.xlu0 %758 }
 0x110   : > { %v2959_v3 = vpack.i.b16 %v537_v58, %v535_v53  ;;  %v551_v6 = vshrl.u32 %v537_v58, 16  ;;  %v2991_v27 = vrot.slane %v2975_v16, %v2775_v36  ;;  %v770_v28 = vshrl.u32 %v759_v59, 16 }
 0x111   : > { %1208 = vrot.lane.b32.xlu0 %v1104_v60, %s2621_s23  ;;  %1190 = vrot.lane.b32.xlu1 %v1168_v0, %s2625_s27 }
 0x112   : > { %v576_v4 = vrot.slane %v2959_v3, %v2775_v36  ;;  %v552_v38 = vpack.i.b16 %v551_v6, %v550_v9  ;;  %v569_v47 = vcombine.high %v2959_v3, %v2769_v33 }
 0x113   : > { %v761_v7 = vpop.permute.xlu1 %760  ;;  %v763_v8 = vpop.permute.xlu0 %762 }
 0x114   : > { %v585_v10 = vcombine.high %v561_v5, %v576_v4  ;;  %v2969_v12 = vpack.i.b16 %v761_v7, %v759_v59  ;;  %v2983_v20 = vrot.slane %v552_v38, %v2775_v36  ;;  %v771_v21 = vshrl.u32 %v761_v7, 16 }
 0x115   : > { %1199 = vrot.lane.b32.xlu1 %v1169_v39, %s2623_s25  ;;  %v778_v55 = vshrl.u32 %v763_v8, 16  ;;  %v584_v32 = vcombine.low %v561_v5, %v576_v4  ;;  %v554_v59 = vcombine.high %v2955_v57, %v2769_v33  ;;  %v635_v60 = vcombine.high %v552_v38, %v2769_v33 }
 0x116   : > { %v599_v15 = vrot.slane %v585_v10, %v2800_v52  ;;  %v789_v18 = vrot.slane %v2969_v12, %v2775_v36  ;;  %v2998_v34 = vpack.i.b16 %v771_v21, %v770_v28  ;;  %v650_v44 = vcombine.low %v2991_v27, %v2983_v20 }
 0x117   : > { %v765_v13 = vpop.permute.xlu1 %764  ;;  %v2971_v14 = vpop.permute.xlu0 %1936  ;;  %v3036_v58 = vrot.slane %v584_v32, %v2800_v52  ;;  %v620_v5 = vcombine.high %v2975_v16, %v2769_v33  ;;  %v583_v6 = vrot.slane %v569_v47, %v2775_v36  ;;  %v568_v10 = vrot.slane %v554_v59, %v2775_v36 }
 0x118   : > { %v776_v2 = vpack.i.b16 %v765_v13, %v763_v8  ;;  %v779_v17 = vshrl.u32 %v765_v13, 16  ;;  %696 = vrot.lane.b32.xlu0 %v599_v15, %s2619_s21  ;;  %v855_v49 = vrot.slane %v2998_v34, %v2775_v36  ;;  %v3033_v56 = vrot.slane %v650_v44, %v2800_v52 }
 0x119   : > { %1211 = vrot.lane.b32.xlu1 %v1170_v62, %s2625_s27  ;;  %v617_v3 = vcombine.high %v599_v15, %v3824_v23  ;;  %v616_v48 = vcombine.high %v3036_v58, %v3824_v23  ;;  %v782_v22 = vcombine.high %v2969_v12, %v2769_v33  ;;  %v3073_v15 = vrot.slane %v635_v60, %v2775_v36 }
 0x11a   : > { %v804_v19 = vrot.slane %v776_v2, %v2775_v36  ;;  %v2993_v29 = vpack.i.b16 %v779_v17, %v778_v55  ;;  %v797_v7 = vcombine.high %v776_v2, %v2769_v33  ;;  %v601_v17 = vcombine.high %v568_v10, %v583_v6 }
 0x11b   : > { %v2985_v61 = vpop.permute.xlu1 %1938  ;;  %v2987_v25 = vpop.permute.xlu0 %1940 }
 0x11c   : > { %v812_v26 = vcombine.low %v789_v18, %v804_v19  ;;  %v813_v30 = vcombine.high %v789_v18, %v804_v19  ;;  %v870_v42 = vrot.slane %v2993_v29, %v2775_v36  ;;  %v3025_v51 = vpack.i.b16 %v2985_v61, %v2971_v14 }
 0x11d   : > { %v811_v62 = vrot.slane %v797_v7, %v2775_v36  ;;  %v634_v18 = vrot.slane %v620_v5, %v2775_v36  ;;  %v796_v19 = vrot.slane %v782_v22, %v2775_v36  ;;  %v615_v32 = vrot.slane %v601_v17, %v2800_v52 }
 0x11e   : > { %v2996_v31 = vrot.slane %v812_v26, %v2800_v52  ;;  %v3005_v37 = vrot.slane %v813_v30, %v2800_v52  ;;  %v879_v4 = vcombine.high %v855_v49, %v870_v42  ;;  %v3054_v57 = vrot.slane %v3025_v51, %v2775_v36 }
 0x11f   : > { %v3000_v35 = vpop.permute.xlu1 %1942  ;;  %v3002_v40 = vpop.permute.xlu0 %2164  ;;  %v878_v9 = vcombine.low %v855_v49, %v870_v42  ;;  %v666_v55 = vcombine.low %v634_v18, %v3073_v15  ;;  %v600_v26 = vcombine.low %v568_v10, %v583_v6  ;;  %v829_v44 = vcombine.high %v796_v19, %v811_v62 }
 0x120   : > { %v3013_v45 = vpack.i.b16 %v3000_v35, %v2987_v25  ;;  %924 = vrot.lane.b32.xlu1 %v3005_v37, %s2619_s21  ;;  %v844_v46 = vcombine.high %v2996_v31, %v3824_v23  ;;  %v3068_v38 = vrot.slane %v879_v4, %v2800_v52  ;;  %v828_v47 = vcombine.low %v796_v19, %v811_v62 }
 0x121   : > { %v886_v12 = vrot.slane %v878_v9, %v2800_v52  ;;  %v3099_v42 = vrot.slane %v666_v55, %v2800_v52  ;;  %v863_v49 = vcombine.high %v2993_v29, %v2769_v33  ;;  %v651_v4 = vcombine.high %v2991_v27, %v2983_v20 }
 0x122   : > { %918 = vrot.lane.b32.xlu0 %v844_v46, %s2622_s24  ;;  %v3043_v0 = vrot.slane %v3013_v45, %v2775_v36  ;;  %v3102_v46 = vrot.slane %v600_v26, %v2800_v52  ;;  %v848_v5 = vcombine.high %v2998_v34, %v2769_v33  ;;  %v3121_v6 = vrot.slane %v828_v47, %v2800_v52 }
 0x123   : > { %v3028_v53 = vpop.permute.xlu1 %2166  ;;  %v3030_v54 = vpop.permute.xlu0 %2168  ;;  %v665_v9 = vrot.slane %v651_v4, %v2800_v52  ;;  %v877_v20 = vrot.slane %v863_v49, %v2775_v36  ;;  %v682_v17 = vcombine.high %v3033_v56, %v3824_v23  ;;  %v1957_v19 = vshrl.u32 %v3000_v35, 16 }
 0x124   : > { %687 = vrot.lane.b32.xlu1 %v3033_v56, %s2620_s22  ;;  %v1991_v13 = vcombine.high %v3054_v57, %v3043_v0  ;;  %3836 = vst [vmem:[#allocation4_spill] sm:$0xff] %v3102_v46  ;;  %v618_v29 = vcombine.high %v3102_v46, %v3824_v23  ;;  %3837 = vst [vmem:[#allocation5_spill] sm:$0xff] %v3121_v6  ;;  %v846_v27 = vcombine.high %v3121_v6, %v3824_v23 }
 0x125   : > { %v862_v34 = vrot.slane %v848_v5, %v2775_v36  ;;  %v667_v47 = vcombine.high %v634_v18, %v3073_v15  ;;  %v1956_v49 = vshrl.u32 %v2987_v25, 16  ;;  %v910_v35 = vcombine.high %v886_v12, %v3824_v23 }
 0x126   : > { %702 = vrot.lane.b32.xlu0 %v617_v3, %s2621_s23  ;;  %v3087_v21 = vrot.slane %v1991_v13, %v2800_v52  ;;  %v843_v3 = vrot.slane %v829_v44, %v2800_v52  ;;  %v845_v13 = vcombine.high %v3005_v37, %v3824_v23  ;;  %v1949_v37 = vshrl.u32 %v2985_v61, 16 }
 0x127   : > { %v3057_v8 = vpop.permute.xlu1 %2170  ;;  %v3059_v39 = vpop.permute.xlu0 %1471  ;;  %v894_v62 = vcombine.low %v862_v34, %v877_v20  ;;  %v1948_v56 = vshrl.u32 %v2971_v14, 16  ;;  %v1958_v4 = vpack.i.b16 %v1957_v19, %v1956_v49  ;;  %v3166_v15 = vrot.slane %v667_v47, %v2800_v52 }
 0x128   : > { %690 = vrot.lane.b32.xlu1 %v616_v48, %s2622_s24  ;;  %v619_v25 = vcombine.high %v615_v32, %v3824_v23  ;;  %v895_v18 = vcombine.high %v862_v34, %v877_v20  ;;  %v1975_v14 = vcombine.high %v3013_v45, %v2769_v33 }
 0x129   : > { %v3151_v44 = vrot.slane %v894_v62, %v2800_v52  ;;  %v1950_v61 = vpack.i.b16 %v1949_v37, %v1948_v56  ;;  %v847_v62 = vcombine.high %v843_v3, %v3824_v23 }
 0x12a   : > { %927 = vrot.lane.b32.xlu0 %v3068_v38, %s2624_s26  ;;  %v909_v45 = vrot.slane %v895_v18, %v2800_v52  ;;  %v1989_v20 = vrot.slane %v1975_v14, %v2775_v36 }
 0x12b   : > { %v3078_v2 = vpop.permute.xlu1 %1473  ;;  %v3080_v16 = vpop.permute.xlu0 %1475  ;;  %v2033_v19 = vrot.slane %v1950_v61, %v2775_v36 }
 0x12c   : > { %915 = vrot.lane.b32.xlu1 %v886_v12, %s2620_s22  ;;  %v2048_v12 = vrot.slane %v1958_v4, %v2775_v36 }
 0x12e   : > { %2102 = vrot.lane.b32.xlu0 %v3087_v21, %s2619_s21 }
 0x12f   : > { %v3092_v28 = vpop.permute.xlu1 %1477  ;;  %v3094_v30 = vpop.permute.xlu0 %1243 }
 0x130   : > { %717 = vrot.lane.b32.xlu1 %v615_v32, %s2619_s21  ;;  %v1990_v32 = vcombine.low %v3054_v57, %v3043_v0  ;;  %v683_v0 = vcombine.high %v665_v9, %v3824_v23 }
 0x132   : > { %708 = vrot.lane.b32.xlu0 %v3099_v42, %s2620_s22  ;;  %v3199_v57 = vrot.slane %v1990_v32, %v2800_v52  ;;  %v1489_v32 = vpack.i.b16 %v3092_v28, %v3080_v16 }
 0x133   : > { %v3108_v59 = vpop.permute.xlu1 %1245  ;;  %v3110_v60 = vpop.permute.xlu0 %1247 }
 0x134   : > { %945 = vrot.lane.b32.xlu1 %v843_v3, %s2619_s21  ;;  %v2056_v3 = vcombine.low %v2033_v19, %v2048_v12 }
 0x136   : > { %711 = vrot.lane.b32.xlu0 %v618_v29, %s2622_s24  ;;  %v3207_v56 = vrot.slane %v2056_v3, %v2800_v52  ;;  %v2041_v3 = vcombine.high %v1958_v4, %v2769_v33 }
 0x137   : > { %v3124_v7 = vpop.permute.xlu1 %1249  ;;  %v3126_v48 = vpop.permute.xlu0 %457 }
 0x138   : > { %699 = vrot.lane.b32.xlu1 %v665_v9, %s2624_s26 }
 0x13a   : > { %939 = vrot.lane.b32.xlu0 %v846_v27, %s2622_s24 }
 0x13b   : > { %v3135_v10 = vpop.permute.xlu1 %463  ;;  %v3137_v22 = vpop.permute.xlu0 %448 }
 0x13c   : > { %930 = vrot.lane.b32.xlu1 %v845_v13, %s2621_s23 }
 0x13e   : > { %693 = vrot.lane.b32.xlu0 %v682_v17, %s2623_s25  ;;  %v1960_v17 = vcombine.high %v3025_v51, %v2769_v33  ;;  %v911_v51 = vcombine.high %v3068_v38, %v3824_v23 }
 0x13f   : > { %v3146_v55 = vpop.permute.xlu1 %472  ;;  %v3148_v26 = vpop.permute.xlu0 %451 }
 0x140   : > { %3838 = vst [vmem:[#allocation6_spill] sm:$0xff] %v3146_v55  ;;  %936 = vrot.lane.b32.xlu1 %v3151_v44, %s2620_s22  ;;  %v1974_v37 = vrot.slane %v1960_v17, %v2775_v36 }
 0x142   : > { %921 = vrot.lane.b32.xlu0 %v910_v35, %s2623_s25  ;;  %v2007_v38 = vcombine.high %v1974_v37, %v1989_v20  ;;  %v2006_v17 = vcombine.low %v1974_v37, %v1989_v20  ;;  %v2026_v20 = vcombine.high %v1950_v61, %v2769_v33  ;;  %v913_v37 = vcombine.high %v909_v45, %v3824_v23 }
 0x143   : > { %v3161_v5 = vpop.permute.xlu1 %454  ;;  %v3163_v29 = vpop.permute.xlu0 %478  ;;  %v912_v61 = vcombine.high %v3151_v44, %v3824_v23 }
 0x144   : > { %3839 = vst [vmem:[#allocation7_spill] sm:$0xff] %v3163_v29  ;;  %720 = vrot.lane.b32.xlu1 %v3166_v15, %s2624_s26  ;;  %v3219_v14 = vrot.slane %v2007_v38, %v2800_v52  ;;  %v3246_v4 = vrot.slane %v2006_v17, %v2800_v52  ;;  %v1491_v17 = vshrl.u32 %v3080_v16, 16  ;;  %v685_v16 = vcombine.high %v3166_v15, %v3824_v23 }
 0x146   : > { %723 = vrot.lane.b32.xlu0 %v619_v25, %s2621_s23  ;;  %v2022_v25 = vcombine.high %v3199_v57, %v3824_v23  ;;  %3846 = vst [vmem:[#allocation14_spill] sm:$0xff] %v3246_v4  ;;  %v2024_v44 = vcombine.high %v3246_v4, %v3824_v23 }
 0x147   : > { %v3175_v27 = vpop.permute.xlu1 %481  ;;  %v3177_v13 = vpop.permute.xlu0 %460 }
 0x148   : > { %3840 = vst [vmem:[#allocation8_spill] sm:$0xff] %v3175_v27  ;;  %951 = vrot.lane.b32.xlu1 %v847_v62, %s2621_s23  ;;  %v2057_v62 = vcombine.high %v2033_v19, %v2048_v12 }
 0x14a   : > { %948 = vrot.lane.b32.xlu0 %v909_v45, %s2624_s26  ;;  %v3236_v19 = vrot.slane %v2057_v62, %v2800_v52 }
 0x14b   : > { %v3189_v34 = vpop.permute.xlu1 %484  ;;  %v3191_v47 = vpop.permute.xlu0 %1874 }
 0x14c   : > { %3841 = vst [vmem:[#allocation9_spill] sm:$0xff] %v3189_v34  ;;  %3842 = vst [vmem:[#allocation10_spill] sm:$0xff] %v3191_v47  ;;  %933 = vrot.lane.b32.xlu1 %v911_v51, %s2625_s27  ;;  %v684_v51 = vcombine.high %v3099_v42, %v3824_v23  ;;  %v3240_v42 = vrot.slane %v1489_v32, %v2775_v36  ;;  %v1484_v47 = vshrl.u32 %v3078_v2, 16  ;;  %v1263_v34 = vshrl.u32 %v3110_v60, 16 }
 0x14e   : > { %705 = vrot.lane.b32.xlu0 %v683_v0, %s2625_s27  ;;  %v1481_v0 = vpack.i.b16 %v3078_v2, %v3059_v39  ;;  %v3274_v2 = vpack.i.b16 %v3108_v59, %v3094_v30 }
 0x14f   : > { %v3202_v49 = vpop.permute.xlu1 %1865  ;;  %v3204_v35 = vpop.permute.xlu0 %469 }
 0x150   : > { %3843 = vst [vmem:[#allocation11_spill] sm:$0xff] %v3202_v49  ;;  %2093 = vrot.lane.b32.xlu1 %v3207_v56, %s2620_s22  ;;  %v1502_v62 = vrot.slane %v1481_v0, %v2775_v36  ;;  %v1495_v15 = vcombine.high %v1481_v0, %v2769_v33  ;;  %v1274_v23 = vrot.slane %v3274_v2, %v2775_v36 }
 0x152   : > { %2096 = vrot.lane.b32.xlu0 %v2022_v25, %s2622_s24  ;;  %v1492_v25 = vshrl.u32 %v3092_v28, 16  ;;  %v1526_v28 = vcombine.high %v1502_v62, %v3240_v42  ;;  %v3312_v6 = vrot.slane %v1495_v15, %v2775_v36 }
 0x153   : > { %v3214_v9 = vpop.permute.xlu1 %1868  ;;  %v3216_v18 = vpop.permute.xlu0 %466 }
 0x154   : > { %3844 = vst [vmem:[#allocation12_spill] sm:$0xff] %v3214_v9  ;;  %2123 = vrot.lane.b32.xlu1 %v3219_v14, %s2619_s21  ;;  %v2040_v9 = vrot.slane %v2026_v20, %v2775_v36 }
 0x156   : > { %714 = vrot.lane.b32.xlu0 %v684_v51, %s2623_s25  ;;  %v2055_v51 = vrot.slane %v2041_v3, %v2775_v36  ;;  %v3264_v3 = vpack.i.b16 %v3124_v7, %v3110_v60 }
 0x157   : > { %v3231_v38 = vpop.permute.xlu1 %1895  ;;  %v3233_v12 = vpop.permute.xlu0 %1877 }
 0x158   : > { %3845 = vst [vmem:[#allocation13_spill] sm:$0xff] %v3233_v12  ;;  %2105 = vrot.lane.b32.xlu1 %v3236_v19, %s2624_s26  ;;  %v2073_v4 = vcombine.high %v2040_v9, %v2055_v51 }
 0x15a   : > { %954 = vrot.lane.b32.xlu0 %v913_v37, %s2625_s27  ;;  %v1483_v37 = vshrl.u32 %v3059_v39, 16  ;;  %v1510_v39 = vcombine.high %v1489_v32, %v2769_v33 }
 0x15b   : > { %v3254_v12 = vpop.permute.xlu1 %1880  ;;  %v3256_v45 = vpop.permute.xlu0 %487 }
 0x15c   : > { %3847 = vst [vmem:[#allocation15_spill] sm:$0xff] %v3254_v12  ;;  %3848 = vst [vmem:[#allocation16_spill] sm:$0xff] %v3256_v45  ;;  %942 = vrot.lane.b32.xlu1 %v912_v61, %s2623_s25  ;;  %v3270_v12 = vpack.i.b16 %v1492_v25, %v1491_v17  ;;  %v2072_v61 = vcombine.low %v2040_v9, %v2055_v51  ;;  %v3283_v49 = vpack.i.b16 %v1484_v47, %v1483_v37 }
 0x15d   : > { %v1289_v25 = vrot.slane %v3264_v3, %v2775_v36  ;;  %v3290_v17 = vrot.slane %v1526_v28, %v2800_v52  ;;  %v1264_v47 = vshrl.u32 %v3124_v7, 16  ;;  %v3304_v0 = vrot.slane %v1510_v39, %v2775_v36 }
 0x15e   : > { %2117 = vrot.lane.b32.xlu0 %v2024_v44, %s2622_s24  ;;  %v1583_v44 = vrot.slane %v3270_v12, %v2775_v36  ;;  %v1568_v28 = vrot.slane %v3283_v49, %v2775_v36  ;;  %v1256_v45 = vshrl.u32 %v3108_v59, 16  ;;  %v3850_v7 = vmov 0  }
 0x15f   : > { %v3279_v20 = vpop.permute.xlu1 %475  ;;  %v3281_v41 = vpop.permute.xlu0 %1181  ;;  %v1298_v27 = vcombine.high %v1274_v23, %v1289_v25  ;;  %v2088_v29 = vcombine.high %v3207_v56, %v3850_v7  ;;  %v1255_v9 = vshrl.u32 %v3094_v30, 16  ;;  %v1525_v51 = vcombine.low %v1502_v62, %v3240_v42 }
 0x160   : > { %3849 = vst [vmem:[#allocation17_spill] sm:$0xff] %v3279_v20  ;;  %726 = vrot.lane.b32.xlu1 %v685_v16, %s2625_s27  ;;  %v2080_v16 = vrot.slane %v2072_v61, %v2800_v52  ;;  %v3316_v61 = vpack.i.b16 %v1264_v47, %v1263_v34  ;;  %v3324_v39 = vrot.slane %v2073_v4, %v2800_v52 }
 0x161   : > { %v1591_v20 = vcombine.low %v1568_v28, %v1583_v44  ;;  %v3326_v56 = vpack.i.b16 %v1256_v45, %v1255_v9  ;;  %v1297_v15 = vcombine.low %v1274_v23, %v1289_v25  ;;  %v3331_v30 = vrot.slane %v1298_v27, %v2800_v52 }
 0x162   : > { %1637 = vrot.lane.b32.xlu0 %v3290_v17, %s2619_s21  ;;  %v3337_v34 = vrot.slane %v3316_v61, %v2775_v36  ;;  %v3347_v62 = vrot.slane %v1525_v51, %v2800_v52  ;;  %v1282_v47 = vcombine.high %v3264_v3, %v2769_v33  ;;  %v1592_v55 = vcombine.high %v1568_v28, %v1583_v44 }
 0x163   : > { %v1887_v32 = vpop.permute.xlu1 %1886  ;;  %v1890_v37 = vpop.permute.xlu0 %1889  ;;  %v3344_v23 = vrot.slane %v1591_v20, %v2800_v52  ;;  %v1340_v27 = vrot.slane %v3326_v56, %v2775_v36  ;;  %v3357_v25 = vrot.slane %v1297_v15, %v2800_v52 }
 0x164   : > { %2114 = vrot.lane.b32.xlu1 %v2080_v16, %s2620_s22  ;;  %3852 = vst [vmem:[#allocation19_spill] sm:$0xff] %v3347_v62  ;;  %v1557_v51 = vcombine.high %v3347_v62, %v3850_v7  ;;  %v3372_v3 = vrot.slane %v1282_v47, %v2775_v36  ;;  %v3390_v28 = vrot.slane %v1592_v55, %v2800_v52 }
 0x165   : > { %3853 = vst [vmem:[#allocation20_spill] sm:$0xff] %v3357_v25  ;;  %v1329_v15 = vcombine.high %v3357_v25, %v3850_v7  ;;  %v1561_v47 = vcombine.high %v3283_v49, %v2769_v33 }
 0x166   : > { %2099 = vrot.lane.b32.xlu0 %v2088_v29, %s2623_s25  ;;  %v1542_v29 = vcombine.high %v3312_v6, %v3304_v0 }
 0x167   : > { %v3319_v59 = vpop.permute.xlu1 %1898  ;;  %v3321_v60 = vpop.permute.xlu0 %1871  ;;  %v1575_v25 = vrot.slane %v1561_v47, %v2775_v36 }
 0x168   : > { %3851 = vst [vmem:[#allocation18_spill] sm:$0xff] %v3321_v60  ;;  %2126 = vrot.lane.b32.xlu1 %v3324_v39, %s2624_s26  ;;  %v3354_v45 = vrot.slane %v1542_v29, %v2800_v52  ;;  %v1363_v60 = vcombine.low %v1340_v27, %v3337_v34  ;;  %v1267_v29 = vcombine.high %v3274_v2, %v2769_v33 }
 0x169   : > { %v1923_v2 = vsel %vm489_vm7, %v2900_v11, %v1887_v32 }
 0x16a   : > { %1409 = vrot.lane.b32.xlu0 %v3331_v30, %s2619_s21  ;;  %v3378_v62 = vrot.slane %v1363_v60, %v2800_v52  ;;  %v3385_v44 = vrot.slane %v1267_v29, %v2775_v36  ;;  %v1925_v60 = vsel %vm493_vm8, %v1923_v2, %v1890_v37  ;;  %v2090_v29 = vcombine.high %v2080_v16, %v3850_v7 }
 0x16b   : > { %v3341_v42 = vpop.permute.xlu1 %1901  ;;  %v1173_v4 = vpop.permute.xlu0 %1172  ;;  %v1364_v16 = vcombine.high %v1340_v27, %v3337_v34 }
 0x16c   : > { %1628 = vrot.lane.b32.xlu1 %v3344_v23, %s2620_s22  ;;  %v1314_v55 = vcombine.high %v3385_v44, %v3372_v3  ;;  %v1215_v2 = vsel %vm489_vm7, %v2922_v24, %v1173_v4  ;;  %v1348_v24 = vcombine.high %v3316_v61, %v2769_v33 }
 0x16d   : > { %v3428_v27 = vrot.slane %v1364_v16, %v2800_v52 }
 0x16e   : > { %1658 = vrot.lane.b32.xlu0 %v3354_v45, %s2619_s21 }
 0x16f   : > { %v1185_v20 = vpop.permute.xlu1 %1184  ;;  %v1176_v9 = vpop.permute.xlu0 %1175 }
 0x170   : > { %1631 = vrot.lane.b32.xlu1 %v1557_v51, %s2622_s24  ;;  %v1576_v51 = vcombine.high %v3270_v12, %v2769_v33 }
 0x172   : > { %1403 = vrot.lane.b32.xlu0 %v1329_v15, %s2622_s24  ;;  %v1590_v37 = vrot.slane %v1576_v51, %v2775_v36 }
 0x173   : > { %v1194_v46 = vpop.permute.xlu1 %1193  ;;  %v3375_v1 = vpop.permute.xlu0 %1202 }
 0x174   : > { %1400 = vrot.lane.b32.xlu1 %v3378_v62, %s2620_s22  ;;  %v1230_v11 = vsel %vm489_vm7, %v2938_v43, %v1194_v46  ;;  %v1558_v46 = vcombine.high %v3290_v17, %v3850_v7 }
 0x176   : > { %1640 = vrot.lane.b32.xlu0 %v3390_v28, %s2624_s26 }
 0x177   : > { %v1197_v12 = vpop.permute.xlu1 %1196  ;;  %v1893_v32 = vpop.permute.xlu0 %1892 }
 0x178   : > { %v1232_v49 = vsel %vm493_vm8, %v1230_v11, %v1197_v12  ;;  %v1927_v15 = vsel %vm496_vm9, %v1925_v60, %v1893_v32  ;;  %2120 = vrot.lane.b32.xlu1 %v2090_v29, %s2623_s25  ;;  %v1217_v60 = vsel %vm493_vm8, %v1215_v2, %v1176_v9  ;;  %v1541_v12 = vcombine.low %v3312_v6, %v3304_v0 }
 0x179   : > { %v1929_v43 = vsel %vm499_vm10, %v1927_v15, %v3231_v38  ;;  %v1328_v38 = vrot.slane %v1314_v55, %v2800_v52  ;;  %v1607_v9 = vcombine.low %v1575_v25, %v1590_v37  ;;  %v1333_v6 = vcombine.high %v3326_v56, %v2769_v33 }
 0x17a   : > { %1643 = vrot.lane.b32.xlu0 %v1558_v46, %s2621_s23  ;;  %v1931_v34 = vsel %vm502_vm11, %v1929_v43, %v3319_v59  ;;  %v1623_v32 = vcombine.high %v3344_v23, %v3850_v7  ;;  %v1608_v29 = vcombine.high %v1575_v25, %v1590_v37  ;;  %v1362_v55 = vrot.slane %v1348_v24, %v2775_v36 }
 0x17b   : > { %v1179_v51 = vpop.permute.xlu1 %1178  ;;  %v1188_v11 = vpop.permute.xlu0 %1187  ;;  %v3447_v15 = vrot.slane %v1541_v12, %v2800_v52  ;;  %v1347_v43 = vrot.slane %v1333_v6, %v2775_v36  ;;  %v1313_v37 = vcombine.low %v3385_v44, %v3372_v3 }
 0x17c   : > { %v1219_v17 = vsel %vm496_vm9, %v1217_v60, %v1179_v51  ;;  %1430 = vrot.lane.b32.xlu1 %v1328_v38, %s2619_s21  ;;  %v1622_v23 = vrot.slane %v1608_v29, %v2800_v52  ;;  %v1560_v60 = vcombine.high %v3354_v45, %v3850_v7  ;;  %v2177_v29 = vshrl.u32 %v3028_v53, 16 }
 0x17d   : > { %v1221_v4 = vsel %vm499_vm10, %v1219_v17, %v3281_v41  ;;  %v1933_v41 = vsel %vm505_vm12, %v1931_v34, %v3341_v42  ;;  %v1559_v46 = vcombine.high %v3447_v15, %v3850_v7  ;;  %v1379_v16 = vcombine.low %v1347_v43, %v1362_v55 }
 0x17e   : > { %v1223_v0 = vsel %vm502_vm11, %v1221_v4, %v1185_v20  ;;  %1412 = vrot.lane.b32.xlu0 %v3428_v27, %s2624_s26  ;;  %v1615_v20 = vrot.slane %v1607_v9, %v2800_v52  ;;  %v1380_v51 = vcombine.high %v1347_v43, %v1362_v55  ;;  %v3469_v44 = vrot.slane %v1313_v37, %v2800_v52 }
 0x17f   : > { %v1225_v59 = vsel %vm505_vm12, %v1223_v0, %v1188_v11  ;;  %v1206_v61 = vpop.permute.xlu1 %1205  ;;  %v1905_v47 = vpop.permute.xlu0 %1904  ;;  %v1387_v3 = vrot.slane %v1379_v16, %v2800_v52  ;;  %v1332_v9 = vcombine.high %v1328_v38, %v3850_v7  ;;  %v1395_v0 = vcombine.high %v3378_v62, %v3850_v7 }
 0x180   : > { %v3441_v56 = vsel %vm508_vm13, %v1933_v41, %v1905_v47  ;;  %1634 = vrot.lane.b32.xlu1 %v1623_v32, %s2623_s25  ;;  %v1624_v38 = vcombine.high %v3390_v28, %v3850_v7  ;;  %v2185_v47 = vshrl.u32 %v3057_v8, 16  ;;  %v1626_v62 = vcombine.high %v1622_v23, %v3850_v7 }
 0x181   : > { %v2184_v55 = vshrl.u32 %v3030_v54, 16  ;;  %v2176_v28 = vshrl.u32 %v3002_v40, 16  ;;  %v2182_v37 = vpack.i.b16 %v3057_v8, %v3030_v54  ;;  %v1861_v54 = vcombine.high %v2877_v50, %v3850_v7 }
 0x182   : > { %1649 = vrot.lane.b32.xlu0 %v1615_v20, %s2620_s22 }
 0x183   : > { %v1191_v42 = vpop.permute.xlu1 %1190  ;;  %v1209_v17 = vpop.permute.xlu0 %1208  ;;  %v2203_v8 = vcombine.high %v2182_v37, %v2769_v33 }
 0x184   : > { %v3453_v25 = vsel %vm508_vm13, %v1225_v59, %v1191_v42  ;;  %1661 = vrot.lane.b32.xlu1 %v1622_v23, %s2624_s26  ;;  %v1625_v42 = vcombine.high %v1615_v20, %v3850_v7  ;;  %v1330_v23 = vcombine.high %v3331_v30, %v3850_v7 }
 0x186   : > { %1652 = vrot.lane.b32.xlu0 %v1559_v46, %s2622_s24  ;;  %v2186_v46 = vpack.i.b16 %v2185_v47, %v2184_v55  ;;  %v2089_v47 = vcombine.high %v3236_v19, %v3850_v7  ;;  %v1396_v55 = vcombine.high %v3428_v27, %v3850_v7 }
 0x187   : > { %v1200_v2 = vpop.permute.xlu1 %1199 }
 0x188   : > { %v1234_v11 = vsel %vm496_vm9, %v1232_v49, %v1200_v2  ;;  %1664 = vrot.lane.b32.xlu1 %v1560_v60, %s2621_s23  ;;  %v1394_v49 = vrot.slane %v1380_v51, %v2800_v52  ;;  %v2174_v2 = vpack.i.b16 %v3028_v53, %v3002_v40  ;;  %v2178_v60 = vpack.i.b16 %v2177_v29, %v2176_v28 }
 0x189   : > { %v1236_v12 = vsel %vm499_vm10, %v1234_v11, %v3375_v1  ;;  %v1331_v1 = vcombine.high %v3469_v44, %v3850_v7  ;;  %v2025_v51 = vcombine.high %v3219_v14, %v3850_v7  ;;  %v2269_v11 = vcombine.high %v2186_v46, %v2769_v33 }
 0x18a   : > { %v1238_v34 = vsel %vm502_vm11, %v1236_v12, %v1206_v61  ;;  %1421 = vrot.lane.b32.xlu0 %v1387_v3, %s2620_s22  ;;  %v3483_v6 = vpop.permute.xlu0 %696  ;;  %v1397_v61 = vcombine.high %v1387_v3, %v3850_v7  ;;  %v2188_v40 = vcombine.high %v2174_v2, %v2769_v33  ;;  %v2254_v53 = vcombine.high %v2178_v60, %v2769_v33 }
 0x18b   : > { %v1212_v24 = vpop.permute.xlu1 %1211  ;;  %v1240_v45 = vsel %vm505_vm12, %v1238_v34, %v1209_v17  ;;  %v1398_v14 = vcombine.high %v1394_v49, %v3850_v7  ;;  %v2217_v3 = vrot.slane %v2203_v8, %v2775_v36  ;;  %v3536_v50 = vrot.slane %v2269_v11, %v2775_v36 }
 0x18c   : > { %v3476_v4 = vsel %vm508_vm13, %v1240_v45, %v1212_v24  ;;  %1433 = vrot.lane.b32.xlu1 %v1394_v49, %s2624_s26  ;;  %v2091_v34 = vcombine.high %v3324_v39, %v3850_v7  ;;  %v2202_v33 = vrot.slane %v2188_v40, %v2775_v36  ;;  %v2268_v24 = vrot.slane %v2254_v53, %v2775_v36 }
 0x18d   : > { %v2210_v45 = vrot.slane %v2182_v37, %v2775_v36  ;;  %v3547_v49 = vrot.slane %v2186_v46, %v2775_v36  ;;  %v2261_v39 = vrot.slane %v2178_v60, %v2775_v36 }
 0x18e   : > { %1424 = vrot.lane.b32.xlu0 %v1331_v1, %s2622_s24  ;;  %v2023_v1 = vcombine.high %v3087_v21, %v3850_v7  ;;  %v2235_v40 = vcombine.high %v2202_v33, %v2217_v3 }
 0x190   : > { %1436 = vrot.lane.b32.xlu1 %v1332_v9, %s2621_s23 }
 0x192   : > { %v3488_v59 = vpop.permute.xlu1 %924  ;;  %1406 = vrot.lane.b32.xlu0 %v1395_v0, %s2623_s25  ;;  %v2195_v0 = vrot.slane %v2174_v2, %v2775_v36  ;;  %v2284_v36 = vcombine.low %v2261_v39, %v3547_v49 }
 0x194   : > { %1427 = vrot.lane.b32.xlu1 %v1397_v61, %s2623_s25  ;;  %v3493_v41 = vpop.permute.xlu0 %918  ;;  %v2234_v61 = vcombine.low %v2202_v33, %v2217_v3  ;;  %v2218_v29 = vcombine.low %v2195_v0, %v2210_v45  ;;  %v2292_v46 = vrot.slane %v2284_v36, %v2800_v52  ;;  %v2219_v53 = vcombine.high %v2195_v0, %v2210_v45 }
 0x195   : > { %v2249_v3 = vrot.slane %v2235_v40, %v2800_v52  ;;  %v2301_v33 = vcombine.high %v2268_v24, %v3536_v50 }
 0x196   : > { %v3498_v32 = vpop.permute.xlu1 %687  ;;  %1646 = vrot.lane.b32.xlu0 %v1624_v38, %s2625_s27  ;;  %v3571_v37 = vrot.slane %v2234_v61, %v2800_v52 }
 0x198   : > { %1667 = vrot.lane.b32.xlu1 %v1626_v62, %s2625_s27  ;;  %v3505_v43 = vpop.permute.xlu0 %702  ;;  %v2300_v62 = vcombine.low %v2268_v24, %v3536_v50  ;;  %v2252_v2 = vcombine.high %v3571_v37, %v3850_v7 }
 0x19a   : > { %v3511_v16 = vpop.permute.xlu1 %690  ;;  %1655 = vrot.lane.b32.xlu0 %v1625_v42, %s2623_s25  ;;  %v2308_v28 = vrot.slane %v2300_v62, %v2800_v52 }
 0x19c   : > { %1415 = vrot.lane.b32.xlu1 %v1330_v23, %s2621_s23  ;;  %v3519_v20 = vpop.permute.xlu0 %927  ;;  %v3578_v23 = vrot.slane %v2218_v29, %v2800_v52  ;;  %v2318_v11 = vcombine.high %v2308_v28, %v3850_v7  ;;  %v2315_v29 = vrot.slane %v2301_v33, %v2800_v52  ;;  %v3857_v33 = vld [vmem:[#allocation17_spill] sm:$0xff] }
 0x19e   : > { %v916_v12 = vpop.permute.xlu1 %915  ;;  %2129 = vrot.lane.b32.xlu0 %v2025_v51, %s2621_s23  ;;  %v2250_v51 = vcombine.high %v3578_v23, %v3850_v7 }
 0x1a0   : > { %1883 = vrot.lane.b32.xlu1 %v1861_v54, %s2625_s27  ;;  %v3531_v30 = vpop.permute.xlu0 %2102  ;;  %v958_v54 = vsel %vm489_vm7, %v2996_v31, %v916_v12 }
 0x1a1   : > { %v960_v31 = vsel %vm493_vm8, %v958_v54, %v3493_v41  ;;  %v2233_v41 = vrot.slane %v2219_v53, %v2800_v52  ;;  %v2402_v54 = vrot.slane %v3453_v25, 2  ;;  %v3854_v53 = vld [vmem:[#allocation2_spill] sm:$0xff]  ;;  %v3855_v25 = vld [vmem:[#allocation4_spill] sm:$0xff] }
 0x1a2   : > { %v3538_v17 = vpop.permute.xlu1 %717  ;;  %1439 = vrot.lane.b32.xlu0 %v1398_v14, %s2625_s27 }
 0x1a4   : > { %2132 = vrot.lane.b32.xlu1 %v2091_v34, %s2625_s27  ;;  %v3552_v9 = vpop.permute.xlu0 %708  ;;  %v2316_v34 = vcombine.high %v2292_v46, %v3850_v7 }
 0x1a6   : > { %v3556_v38 = vpop.permute.xlu1 %945  ;;  %2108 = vrot.lane.b32.xlu0 %v2023_v1, %s2621_s23  ;;  %v730_v1 = vsel %vm489_vm7, %v3036_v58, %v3498_v32  ;;  %v2285_v32 = vcombine.high %v2261_v39, %v3547_v49 }
 0x1a7   : > { %v732_v12 = vsel %vm493_vm8, %v730_v1, %v3511_v16  ;;  %v492_v16 = vsel %vm489_vm7, %v2814_v63, %v3137_v22 }
 0x1a8   : > { %2111 = vrot.lane.b32.xlu1 %v2089_v47, %s2625_s27  ;;  %v3563_v21 = vpop.permute.xlu0 %711  ;;  %v495_v50 = vsel %vm493_vm8, %v492_v16, %v3148_v26  ;;  %v2299_v26 = vrot.slane %v2285_v32, %v2800_v52 }
 0x1a9   : > { %v498_v49 = vsel %vm496_vm9, %v495_v50, %v3161_v5 }
 0x1aa   : > { %v700_v42 = vpop.permute.xlu1 %699  ;;  %1418 = vrot.lane.b32.xlu0 %v1396_v55, %s2625_s27  ;;  %v2253_v55 = vcombine.high %v2249_v3, %v3850_v7 }
 0x1ac   : > { %2342 = vrot.lane.b32.xlu1 %v2308_v28, %s2620_s22  ;;  %v3574_v19 = vpop.permute.xlu0 %939 }
 0x1ae   : > { %v931_v27 = vpop.permute.xlu1 %930  ;;  %2321 = vrot.lane.b32.xlu0 %v2292_v46, %s2620_s22 }
 0x1b0   : > { %2345 = vrot.lane.b32.xlu1 %v2252_v2, %s2622_s24  ;;  %v694_v60 = vpop.permute.xlu0 %693 }
 0x1b1   : > { %v734_v45 = vsel %vm496_vm9, %v732_v12, %v694_v60  ;;  %v3856_v12 = vld [vmem:[#allocation6_spill] sm:$0xff] }
 0x1b2   : > { %v3588_v8 = vpop.permute.xlu1 %936  ;;  %2324 = vrot.lane.b32.xlu0 %v2250_v51, %s2622_s24  ;;  %v736_v24 = vsel %vm499_vm10, %v734_v45, %v3483_v6  ;;  %v501_v6 = vsel %vm499_vm10, %v498_v49, %v3126_v48  ;;  %v2251_v48 = vcombine.high %v2233_v41, %v3850_v7 }
 0x1b3   : > { %v504_v5 = vsel %vm502_vm11, %v501_v6, %v3177_v13 }
 0x1b4   : > { %2348 = vrot.lane.b32.xlu1 %v2318_v11, %s2623_s25  ;;  %v922_v14 = vpop.permute.xlu0 %921  ;;  %v507_v46 = vsel %vm505_vm12, %v504_v5, %v3135_v10  ;;  %v2317_v11 = vcombine.high %v2299_v26, %v3850_v7 }
 0x1b5   : > { %v962_v61 = vsel %vm496_vm9, %v960_v31, %v922_v14  ;;  %v510_v60 = vsel %vm508_vm13, %v507_v46, %v3216_v18  ;;  %v513_v14 = vsel %vm489_vm7, %v3854_v53, %v3204_v35  ;;  %v745_v31 = vsel %vm489_vm7, %v3855_v25, %v3552_v9  ;;  %v3858_v9 = vld [vmem:[#allocation5_spill] sm:$0xff] }
 0x1b6   : > { %v3602_v47 = vpop.permute.xlu1 %720  ;;  %2327 = vrot.lane.b32.xlu0 %v2316_v34, %s2623_s25  ;;  %v964_v0 = vsel %vm499_vm10, %v962_v61, %v3488_v59  ;;  %v738_v59 = vsel %vm502_vm11, %v736_v24, %v700_v42  ;;  %v515_v35 = vsel %vm493_vm8, %v513_v14, %v3856_v12  ;;  %v747_v61 = vsel %vm493_vm8, %v745_v31, %v3563_v21 }
 0x1b7   : > { %v966_v22 = vsel %vm502_vm11, %v964_v0, %v3519_v20  ;;  %v740_v52 = vsel %vm505_vm12, %v738_v59, %v3505_v43  ;;  %v517_v45 = vsel %vm496_vm9, %v515_v35, %v3857_v33  ;;  %v973_v16 = vsel %vm489_vm7, %v3858_v9, %v3588_v8  ;;  %v3859_v0 = vld [vmem:[#allocation7_spill] sm:$0xff] }
 0x1b8   : > { %2351 = vrot.lane.b32.xlu1 %v2249_v3, %s2619_s21  ;;  %v3609_v58 = vpop.permute.xlu0 %723  ;;  %v968_v36 = vsel %vm505_vm12, %v966_v22, %v931_v27  ;;  %v2319_v27 = vcombine.high %v2315_v29, %v3850_v7  ;;  %v2448_v7 = vld [vmem:[%s3821_s2] sm:$0xff]  ;;  %v519_v50 = vsel %vm499_vm10, %v517_v45, %v3859_v0  ;;  %v975_v49 = vsel %vm493_vm8, %v973_v16, %v3574_v19  ;;  %v3860_v22 = vld [vmem:[#allocation8_spill] sm:$0xff] }
 0x1b9   : > { %v2403_v46 = vrot.slane %v3476_v4, 2 }
 0x1ba   : > { %v3622_v62 = vpop.permute.xlu1 %951  ;;  %2330 = vrot.lane.b32.xlu0 %v2233_v41, %s2619_s21 }
 0x1bc   : > { %2354 = vrot.lane.b32.xlu1 %v2315_v29, %s2624_s26  ;;  %v949_v63 = vpop.permute.xlu0 %948 }
 0x1be   : > { %v934_v39 = vpop.permute.xlu1 %933  ;;  %2333 = vrot.lane.b32.xlu0 %v2299_v26, %s2624_s26  ;;  %v521_v26 = vsel %vm502_vm11, %v519_v50, %v3860_v22 }
 0x1bf   : > { %v970_v28 = vsel %vm508_vm13, %v968_v36, %v934_v39 }
 0x1c0   : > { %2357 = vrot.lane.b32.xlu1 %v2253_v55, %s2621_s23  ;;  %v706_v20 = vpop.permute.xlu0 %705  ;;  %v2398_v43 = vrot.slane %v970_v28, 4 }
 0x1c1   : > { %v742_v42 = vsel %vm508_vm13, %v740_v52, %v706_v20 }
 0x1c2   : > { %v2394_v2 = vrot.slane %v742_v42, 6  ;;  %v2094_v13 = vpop.permute.xlu1 %2093  ;;  %2336 = vrot.lane.b32.xlu0 %v2251_v48, %s2621_s23  ;;  %v3862_v42 = vld [vmem:[#allocation16_spill] sm:$0xff] }
 0x1c3   : > { %v2136_v51 = vsel %vm489_vm7, %v3199_v57, %v2094_v13 }
 0x1c4   : > { %2360 = vrot.lane.b32.xlu1 %v2319_v27, %s2625_s27  ;;  %v2097_v10 = vpop.permute.xlu0 %2096  ;;  %v2418_v40 = vsel %vm2416_vm14, %v510_v60, %v2394_v2 }
 0x1c5   : > { %v2138_v18 = vsel %vm493_vm8, %v2136_v51, %v2097_v10  ;;  %v2423_v34 = vsel %vm2421_vm15, %v2418_v40, %v2398_v43 }
 0x1c6   : > { %v2124_v1 = vpop.permute.xlu1 %2123  ;;  %2339 = vrot.lane.b32.xlu0 %v2317_v11, %s2625_s27  ;;  %v2428_v57 = vsel %vm2426_vm0, %v2423_v34, %v2402_v54  ;;  %v3863_v34 = vld [vmem:[#allocation14_spill] sm:$0xff] }
 0x1c8   : > { %v715_v3 = vpop.permute.xlu0 %714 }
 0x1c9   : > { %v749_v41 = vsel %vm496_vm9, %v747_v61, %v715_v3 }
 0x1ca   : > { %v2106_v32 = vpop.permute.xlu1 %2105  ;;  %2451 = vperm.xlu0 %2600, %v2448_v7   ;;  %v751_v24 = vsel %vm499_vm10, %v749_v41, %v3538_v17  ;;  %v3861_v17 = vld [vmem:[#allocation9_spill] sm:$0xff] }
 0x1cb   : > { %v753_v6 = vsel %vm502_vm11, %v751_v24, %v3602_v47  ;;  %v523_v5 = vsel %vm505_vm12, %v521_v26, %v3861_v17 }
 0x1cc   : > { %v955_v29 = vpop.permute.xlu0 %954  ;;  %v755_v28 = vsel %vm505_vm12, %v753_v6, %v3609_v58 }
 0x1ce   : > { %v943_v21 = vpop.permute.xlu1 %942 }
 0x1cf   : > { %v977_v59 = vsel %vm496_vm9, %v975_v49, %v943_v21 }
 0x1d0   : > { %v979_v8 = vsel %vm499_vm10, %v977_v59, %v3556_v38  ;;  %v2118_v39 = vpop.permute.xlu0 %2117 }
 0x1d1   : > { %v981_v55 = vsel %vm502_vm11, %v979_v8, %v949_v63  ;;  %v525_v63 = vsel %vm508_vm13, %v523_v5, %v3862_v42  ;;  %v3865_v5 = vld [vmem:[#allocation11_spill] sm:$0xff] }
 0x1d2   : > { %v983_v19 = vsel %vm505_vm12, %v981_v55, %v3622_v62  ;;  %v727_v36 = vpop.permute.xlu1 %726 }
 0x1d3   : > { %v757_v52 = vsel %vm508_vm13, %v755_v28, %v727_v36  ;;  %v985_v47 = vsel %vm508_vm13, %v983_v19, %v955_v29  ;;  %v3866_v19 = vld [vmem:[#allocation3_spill] sm:$0xff] }
 0x1d4   : > { %v2395_v20 = vrot.slane %v757_v52, 6  ;;  %v3703_v48 = vpop.permute.xlu0 %1637  ;;  %v2399_v38 = vrot.slane %v985_v47, 4  ;;  %v3867_v47 = vld [vmem:[#allocation12_spill] sm:$0xff] }
 0x1d6   : > { %v2115_v2 = vpop.permute.xlu1 %2114  ;;  %v2420_v62 = vsel %vm2416_vm14, %v525_v63, %v2395_v20  ;;  %v3868_v63 = vld [vmem:[#allocation18_spill] sm:$0xff] }
 0x1d7   : > { %v2425_v13 = vsel %vm2421_vm15, %v2420_v62, %v2399_v38 }
 0x1d8   : > { %v2100_v27 = vpop.permute.xlu0 %2099  ;;  %v2431_v58 = vsel %vm2426_vm0, %v2425_v13, %v2403_v46  ;;  %v3869_v13 = vld [vmem:[#allocation20_spill] sm:$0xff] }
 0x1d9   : > { %v2140_v60 = vsel %vm496_vm9, %v2138_v18, %v2100_v27  ;;  %2462 = vmatprep.subr.bf16.mxu0 %v2431_v58  ;;  %v2151_v18 = vsel %vm489_vm7, %v3863_v34, %v2115_v2 }
 0x1da   : > { %v2142_v43 = vsel %vm499_vm10, %v2140_v60, %v3531_v30  ;;  %v3714_v51 = vpop.permute.xlu1 %2126  ;;  %2463 = vmatpush1.bf16.msra.mxu0 %v2428_v57  ;;  %v2153_v30 = vsel %vm493_vm8, %v2151_v18, %v2118_v39  ;;  %v3864_v39 = vld [vmem:[#allocation19_spill] sm:$0xff] }
 0x1db   : > { %v3717_v54 = vsel %vm502_vm11, %v2142_v43, %v2106_v32 }
 0x1dc   : > { %v3719_v4 = vpop.permute.xlu0 %1409 }
 0x1de   : > { %v1629_v10 = vpop.permute.xlu1 %1628 }
 0x1df   : > { %v1671_v55 = vsel %vm489_vm7, %v3864_v39, %v1629_v10 }
 0x1e0   : > { %v1659_v11 = vpop.permute.xlu0 %1658 }
 0x1e2   : > { %v1632_v40 = vpop.permute.xlu1 %1631 }
 0x1e3   : > { %v1673_v36 = vsel %vm493_vm8, %v1671_v55, %v1632_v40 }
 0x1e4   : > { %v1404_v53 = vpop.permute.xlu0 %1403 }
 0x1e6   : > { %v1401_v14 = vpop.permute.xlu1 %1400 }
 0x1e7   : > { %v1443_v27 = vsel %vm489_vm7, %v3869_v13, %v1401_v14 }
 0x1e8   : > { %v1641_v25 = vpop.permute.xlu0 %1640  ;;  %v1445_v34 = vsel %vm493_vm8, %v1443_v27, %v1404_v53 }
 0x1ea   : > { %v2121_v31 = vpop.permute.xlu1 %2120 }
 0x1eb   : > { %v2155_v7 = vsel %vm496_vm9, %v2153_v30, %v2121_v31 }
 0x1ec   : > { %v2157_v57 = vsel %vm499_vm10, %v2155_v7, %v2124_v1  ;;  %v1644_v12 = vpop.permute.xlu0 %1643 }
 0x1ee   : > { %v1431_v35 = vpop.permute.xlu1 %1430 }
 0x1f0   : > { %v3726_v61 = vpop.permute.xlu0 %1412 }
 0x1f2   : > { %v1635_v3 = vpop.permute.xlu1 %1634 }
 0x1f3   : > { %v1675_v38 = vsel %vm496_vm9, %v1673_v36, %v1635_v3 }
 0x1f4   : > { %v1650_v33 = vpop.permute.xlu0 %1649  ;;  %v1677_v43 = vsel %vm499_vm10, %v1675_v38, %v3703_v48 }
 0x1f5   : > { %v1686_v26 = vsel %vm489_vm7, %v3447_v15, %v1650_v33  ;;  %v1679_v14 = vsel %vm502_vm11, %v1677_v43, %v1641_v25  ;;  %v3871_v33 = vld [vmem:[#allocation13_spill] sm:$0xff] }
 0x1f6   : > { %v1662_v45 = vpop.permute.xlu1 %1661 }
 0x1f8   : > { %v1653_v41 = vpop.permute.xlu0 %1652 }
 0x1f9   : > { %v1688_v6 = vsel %vm493_vm8, %v1686_v26, %v1653_v41 }
 0x1fa   : > { %v1665_v32 = vpop.permute.xlu1 %1664 }
 0x1fc   : > { %v1422_v9 = vpop.permute.xlu0 %1421 }
 0x1fd   : > { %v1458_v49 = vsel %vm489_vm7, %v3469_v44, %v1422_v9  ;;  %v1908_v44 = vsel %vm489_vm7, %v3866_v19, %v3865_v5 }
 0x1fe   : > { %v1434_v16 = vpop.permute.xlu1 %1433  ;;  %v1910_v20 = vsel %vm493_vm8, %v1908_v44, %v3867_v47 }
 0x1ff   : > { %v1912_v46 = vsel %vm496_vm9, %v1910_v20, %v3868_v63 }
 0x200   : > { %v1425_v0 = vpop.permute.xlu0 %1424 }
 0x201   : > { %v1460_v1 = vsel %vm493_vm8, %v1458_v49, %v1425_v0 }
 0x202   : > { %v1437_v50 = vpop.permute.xlu1 %1436 }
 0x204   : > { %v1407_v24 = vpop.permute.xlu0 %1406 }
 0x205   : > { %v1447_v7 = vsel %vm496_vm9, %v1445_v34, %v1407_v24 }
 0x206   : > { %v1428_v29 = vpop.permute.xlu1 %1427  ;;  %v1449_v25 = vsel %vm499_vm10, %v1447_v7, %v3719_v4 }
 0x207   : > { %v1462_v59 = vsel %vm496_vm9, %v1460_v1, %v1428_v29  ;;  %v1451_v4 = vsel %vm502_vm11, %v1449_v25, %v3726_v61 }
 0x208   : > { %v1647_v21 = vpop.permute.xlu0 %1646  ;;  %v1464_v28 = vsel %vm499_vm10, %v1462_v59, %v1431_v35  ;;  %v2159_v35 = vsel %vm502_vm11, %v2157_v57, %v3714_v51 }
 0x209   : > { %v1466_v58 = vsel %vm502_vm11, %v1464_v28, %v1434_v16  ;;  %v1681_v16 = vsel %vm505_vm12, %v1679_v14, %v1644_v12 }
 0x20a   : > { %v1668_v22 = vpop.permute.xlu1 %1667  ;;  %v1468_v18 = vsel %vm505_vm12, %v1466_v58, %v1437_v50  ;;  %v1683_v0 = vsel %vm508_vm13, %v1681_v16, %v1647_v21  ;;  %v3872_v50 = vld [vmem:[#allocation15_spill] sm:$0xff] }
 0x20b   : > { %v2406_v21 = vrot.slane %v1683_v0, 6 }
 0x20c   : > { %v1656_v8 = vpop.permute.xlu0 %1655 }
 0x20d   : > { %v1690_v17 = vsel %vm496_vm9, %v1688_v6, %v1656_v8 }
 0x20e   : > { %v1692_v15 = vsel %vm499_vm10, %v1690_v17, %v1659_v11  ;;  %v1416_v52 = vpop.permute.xlu1 %1415  ;;  %v3870_v11 = vld [vmem:[#allocation10_spill] sm:$0xff] }
 0x20f   : > { %v1694_v42 = vsel %vm502_vm11, %v1692_v15, %v1662_v45  ;;  %v1914_v40 = vsel %vm499_vm10, %v1912_v46, %v3870_v11  ;;  %v1453_v26 = vsel %vm505_vm12, %v1451_v4, %v1416_v52 }
 0x210   : > { %v1696_v2 = vsel %vm505_vm12, %v1694_v42, %v1665_v32  ;;  %v2130_v62 = vpop.permute.xlu0 %2129  ;;  %v1916_v45 = vsel %vm502_vm11, %v1914_v40, %v3871_v33  ;;  %v2411_v32 = vrot.slane %v3441_v56, 4 }
 0x211   : > { %v1698_v60 = vsel %vm508_vm13, %v1696_v2, %v1668_v22  ;;  %v2161_v48 = vsel %vm505_vm12, %v2159_v35, %v2130_v62  ;;  %v1918_v24 = vsel %vm505_vm12, %v1916_v45, %v3872_v50 }
 0x212   : > { %v1884_v10 = vpop.permute.xlu1 %1883  ;;  %v2407_v31 = vrot.slane %v1698_v60, 6 }
 0x213   : > { %v1920_v56 = vsel %vm508_vm13, %v1918_v24, %v1884_v10 }
 0x214   : > { %v1440_v30 = vpop.permute.xlu0 %1439  ;;  %v2410_v6 = vrot.slane %v1920_v56, 4 }
 0x215   : > { %v1470_v3 = vsel %vm508_vm13, %v1468_v18, %v1440_v30  ;;  %v2447_v30 = vld [vmem:[%s3820_s1] sm:$0xf] }
 0x216   : > { %v2436_v53 = vsel %vm2416_vm14, %v1470_v3, %v2407_v31  ;;  %v2133_v41 = vpop.permute.xlu1 %2132 }
 0x217   : > { %v2163_v9 = vsel %vm508_vm13, %v2161_v48, %v2133_v41  ;;  %v2440_v49 = vsel %vm2421_vm15, %v2436_v53, %v2411_v32 }
 0x218   : > { %v2415_v51 = vrot.slane %v2163_v9, 2  ;;  %v2109_v57 = vpop.permute.xlu0 %2108 }
 0x219   : > { %v2146_v29 = vsel %vm505_vm12, %v3717_v54, %v2109_v57 }
 0x21a   : > { %v2112_v1 = vpop.permute.xlu1 %2111  ;;  %v2445_v22 = vsel %vm2426_vm0, %v2440_v49, %v2415_v51 }
 0x21b   : > { %v2148_v12 = vsel %vm508_vm13, %v2146_v29, %v2112_v1  ;;  %2464 = vmatprep.subr.bf16.mxu0 %v2445_v22 }
 0x21c   : > { %v1419_v59 = vpop.permute.xlu0 %1418  ;;  %v2414_v8 = vrot.slane %v2148_v12, 2 }
 0x21d   : > { %v1455_v54 = vsel %vm508_vm13, %v1453_v26, %v1419_v59 }
 0x21e   : > { %v2434_v39 = vsel %vm2416_vm14, %v1455_v54, %v2406_v21  ;;  %v2343_v55 = vpop.permute.xlu1 %2342 }
 0x21f   : > { %v2438_v17 = vsel %vm2421_vm15, %v2434_v39, %v2410_v6  ;;  %v2379_v38 = vsel %vm489_vm7, %v3571_v37, %v2343_v55 }
 0x220   : > { %v2322_v5 = vpop.permute.xlu0 %2321  ;;  %v2442_v19 = vsel %vm2426_vm0, %v2438_v17, %v2414_v8 }
 0x221   : > { %2465 = vmatpush1.bf16.msra.mxu0 %v2442_v19  ;;  %v2364_v46 = vsel %vm489_vm7, %v3578_v23, %v2322_v5 }
 0x222   : > { %v2346_v61 = vpop.permute.xlu1 %2345 }
 0x223   : > { %v2381_v42 = vsel %vm493_vm8, %v2379_v38, %v2346_v61 }
 0x224   : > { %v2325_v44 = vpop.permute.xlu0 %2324 }
 0x225   : > { %v2366_v62 = vsel %vm493_vm8, %v2364_v46, %v2325_v44 }
 0x226   : > { %v2349_v36 = vpop.permute.xlu1 %2348 }
 0x227   : > { %v2383_v2 = vsel %vm496_vm9, %v2381_v42, %v2349_v36 }
 0x228   : > { %v2328_v28 = vpop.permute.xlu0 %2327 }
 0x229   : > { %v2368_v58 = vsel %vm496_vm9, %v2366_v62, %v2328_v28 }
 0x22a   : > { %v2352_v15 = vpop.permute.xlu1 %2351 }
 0x22b   : > { %v2385_v13 = vsel %vm499_vm10, %v2383_v2, %v2352_v15 }
 0x22c   : > { %v2331_v52 = vpop.permute.xlu0 %2330 }
 0x22d   : > { %v2370_v37 = vsel %vm499_vm10, %v2368_v58, %v2331_v52 }
 0x22e   : > { %v2355_v47 = vpop.permute.xlu1 %2354 }
 0x22f   : > { %v2387_v60 = vsel %vm502_vm11, %v2385_v13, %v2355_v47 }
 0x230   : > { %v2334_v20 = vpop.permute.xlu0 %2333 }
 0x231   : > { %v2372_v11 = vsel %vm502_vm11, %v2370_v37, %v2334_v20 }
 0x232   : > { %v2358_v63 = vpop.permute.xlu1 %2357 }
 0x233   : > { %v2389_v43 = vsel %vm505_vm12, %v2387_v60, %v2358_v63 }
 0x234   : > { %v2337_v27 = vpop.permute.xlu0 %2336 }
 0x235   : > { %v2374_v40 = vsel %vm505_vm12, %v2372_v11, %v2337_v27 }
 0x236   : > { %v2361_v10 = vpop.permute.xlu1 %2360 }
 0x237   : > { %v2391_v23 = vsel %vm508_vm13, %v2389_v43, %v2361_v10 }
 0x238   : > { %2573 = vmatprep.subr.msk.bf16.mxu0 %vm2416_vm14, %v2391_v23  ;;  %v2340_v34 = vpop.permute.xlu0 %2339 }
 0x239   : > { %v2376_v18 = vsel %vm508_vm13, %v2374_v40, %v2340_v34 }
 0x23a   : > { %v2458_v31 = vsel %vm2416_vm14, %v2376_v18, 0 }
 0x23b   : > { %2467 = vmatpush1.bf16.msra.mxu0 %v2458_v31 }
 0x23e   : > { %2574 = vmatmul.mubr.msk.bf16.vlgmr.msra.gmra.mrb[0].mxu0 %vm2454_vm1, %v2447_v30 }
 0x249   : > { %v2452_v7 = vpop.permute.xlu0 %2451 }
 0x311   : > { %v2496_v14 = vpop.f32.mrb[0].mxu0 }
 0x312   : > { %v2497_v35 = vadd.f32 %v2496_v14, %v2452_v7  ;;  %v2498_v3 = vpop.f32.mrb[1].mxu0 }
 0x313   : > { %v2499_v48 = vadd.f32 %v2498_v3, %v2452_v7  ;;  %v2500_v33 = vpop.f32.mrb[2].mxu0 }
 0x314   : > { %2503 = vst [vmem:[%s170_s8] sm:$0xff] %v2497_v35  ;;  %v2501_v45 = vpop.f32.mrb[3].mxu0 }
 0x315   : > { %2504 = vst [vmem:[%s170_s8 + $0x8] sm:$0xff] %v2499_v48 }
 0x316 PF: > { %s13_s12 = sadd.s32 1, %s2611_s12  }
 0x317   : > { %p10_p4 = scmp.ge.s32.totalorder %s13_s12, 4  }
 0x319   :  { %12 = sbr.rel (!%p10_p4) target bundleno = 1 (0x1), region = 62 }

</bundles_post_ra>
